<compile_context>
chip_gen: v6e
topology: v6e:2x2x1
jax: 0.10.0
libtpu: 0.0.40
codegen_flags: <defaults>
</compile_context>

<pallas_src>
import jax
import jax.numpy as jnp
from jax import lax
from jax.experimental import pallas as pl
from jax.experimental.pallas import tpu as pltpu

FEAT = 384            # feature columns (3 x 128 lanes, no padding needed)
N_SCAL = 5            # score_pitch, former_note, next_note, former_distance, latter_distance
IN_FEATURES = FEAT + N_SCAL   # 389
HIDDEN1 = 100
HIDDEN2 = 1
H1_PAD = 128          # 100 padded up to 128 lanes


def _round_up(a, b):
    return ((a + b - 1) // b) * b


# ----------------------------------------------------------------------------
# Kernel factory: n and tn are static, so the per-chunk trip counts are static
# (full chunks run `tn` steps, the last partial chunk runs `rem` steps) and both
# serial paths can be unrolled.
# ----------------------------------------------------------------------------
def make_rnn_kernel(n, tn, unroll=8):
    num_chunks = -(-n // tn)
    rem = n - (num_chunks - 1) * tn          # steps in the last chunk, 1..tn

    def kernel(feat_ref, scal_ref, wfa_ref, wfb_ref, whh1_ref, b1_ref,
               wih2_ref, sc_ref, out_ref, xproj_ref, h1_ref, h2_ref):
        # h0 = 0 for both RNN layers; init once, carried across chunks in VMEM.
        @pl.when(pl.program_id(0) == 0)
        def _():
            h1_ref[...] = jnp.zeros_like(h1_ref)
            h2_ref[...] = jnp.zeros_like(h2_ref)

        # ---- Phase A: batched input projection for the whole chunk ----
        # (tn, 384) @ (384, 128) on the MXU + bias; the 5 scalar columns are
        # added with broadcast FMAs on the VPU (runs once per chunk).
        acc = jnp.dot(feat_ref[...], wfa_ref[...],
                      preferred_element_type=jnp.float32) + b1_ref[...]
        s = scal_ref[...]                                   # (tn, 8)
        for j in range(N_SCAL):
            acc = acc + s[:, j:j + 1] * wfb_ref[pl.ds(j, 1), :]
        xproj_ref[...] = acc                                # (tn, H1_PAD)

        # Hoist loop-invariant loads.
        whh1 = whh1_ref[...]          # (H1_PAD, H1_PAD)
        wih2 = wih2_ref[...]          # (1, H1_PAD)
        whh2 = sc_ref[0]              # w_hh2 scalar
        b2 = sc_ref[1]                # b_ih2 + b_hh2

        # ---- Fused serial recurrence (layers 1 and 2 in one loop) ----
        def fused_scan(steps):        # steps is a static python int
            def body(t, carry):
                h1, h2 = carry
                pre1 = xproj_ref[pl.ds(t, 1), :] + jnp.dot(
                    h1, whh1, preferred_element_type=jnp.float32)
                h1_new = jnp.tanh(pre1)                     # (1, H1_PAD)
                y1 = jnp.tanh(h1_new)                       # extra F.tanh
                dot2 = jnp.sum(y1 * wih2, axis=-1, keepdims=True) + b2  # (1, 1)
                h2_new = jnp.tanh(dot2 + whh2 * h2)         # (1, 1)
                out_ref[pl.ds(t, 1), :] = h2_new
                return (h1_new, h2_new)

            h1_f, h2_f = lax.fori_loop(
                0, steps, body, (h1_ref[...], h2_ref[...]),
                unroll=min(unroll, steps))
            h1_ref[...] = h1_f        # carry to next chunk
            h2_ref[...] = h2_f

        if num_chunks == 1:
            fused_scan(rem)
        elif rem == tn:
            fused_scan(tn)
        else:
            is_last = pl.program_id(0) == num_chunks - 1

            @pl.when(jnp.logical_not(is_last))
            def _():
                fused_scan(tn)

            @pl.when(is_last)
            def _():
                fused_scan(rem)       # clamped static trip count, still unrolled

    return kernel


# ----------------------------------------------------------------------------
# Wrapper
# ----------------------------------------------------------------------------
def mynet_pallas(features, score_pitch, former_note, next_note,
                 former_distance, latter_distance, params, tn=None):
    f32 = jnp.float32
    n = features.shape[0]
    assert features.shape[1] == FEAT, features.shape

    feat = features.astype(f32)                                  # (n, 384)
    # Pack the 5 scalar columns into a tiny (n, 8) array (3 zero columns).
    scal = jnp.stack(
        [score_pitch.astype(f32), former_note.astype(f32), next_note.astype(f32),
         former_distance.astype(f32), latter_distance.astype(f32)], axis=1)
    scal8 = jnp.concatenate([scal, jnp.zeros((n, 8 - N_SCAL), f32)], axis=1)

    # ---- zero-pad / split weights to lane-aligned shapes (tiny, done once) ----
    w_ih1 = params["w_ih1"].astype(f32)                          # (100, 389)
    wfa = jnp.zeros((FEAT, H1_PAD), f32).at[:, :HIDDEN1].set(w_ih1[:, :FEAT].T)
    wfb = jnp.zeros((8, H1_PAD), f32).at[:N_SCAL, :HIDDEN1].set(w_ih1[:, FEAT:].T)
    whh1 = jnp.zeros((H1_PAD, H1_PAD), f32).at[:HIDDEN1, :HIDDEN1].set(
        params["w_hh1"].T)
    b1 = jnp.zeros((1, H1_PAD), f32).at[0, :HIDDEN1].set(
        params["b_ih1"] + params["b_hh1"])
    wih2 = jnp.zeros((1, H1_PAD), f32).at[0, :HIDDEN1].set(params["w_ih2"][0])
    scalars = jnp.array(
        [params["w_hh2"][0, 0], params["b_ih2"][0] + params["b_hh2"][0]], f32)

    # Sequence chunking: bounds VMEM and lets BlockSpec double-buffer the DMAs.
    if tn is None:
        tn = min(1024, _round_up(max(n, 1), 8))
    num_chunks = -(-n // tn)
    kernel = make_rnn_kernel(n, tn, unroll=8)

    out = pl.pallas_call(
        kernel,
        out_shape=jax.ShapeDtypeStruct((n, HIDDEN2), f32),
        grid=(num_chunks,),
        in_specs=[
            pl.BlockSpec((tn, FEAT), lambda i: (i, 0)),          # features chunk
            pl.BlockSpec((tn, 8), lambda i: (i, 0)),             # packed scalar cols
            pl.BlockSpec((FEAT, H1_PAD), lambda i: (0, 0)),      # W_ih1[:, :384]^T
            pl.BlockSpec((8, H1_PAD), lambda i: (0, 0)),         # W_ih1[:, 384:]^T
            pl.BlockSpec((H1_PAD, H1_PAD), lambda i: (0, 0)),    # W_hh1^T (padded)
            pl.BlockSpec((1, H1_PAD), lambda i: (0, 0)),         # b_ih1 + b_hh1
            pl.BlockSpec((1, H1_PAD), lambda i: (0, 0)),         # W_ih2 row
            pl.BlockSpec(memory_space=pltpu.MemorySpace.SMEM),   # [w_hh2, b2]
        ],
        out_specs=pl.BlockSpec((tn, HIDDEN2), lambda i: (i, 0)),
        scratch_shapes=[
            pltpu.VMEM((tn, H1_PAD), jnp.float32),   # xproj rows for this chunk
            pltpu.VMEM((1, H1_PAD), jnp.float32),    # h1 carried across chunks
            pltpu.VMEM((1, 1), jnp.float32),         # h2 carried across chunks
        ],
        compiler_params=pltpu.CompilerParams(
            dimension_semantics=("arbitrary",)),
    )(feat, scal8, wfa, wfb, whh1, b1, wih2, scalars)
    return out


# ----------------------------------------------------------------------------
# Deterministic parameter init (PyTorch nn.RNN default: U(-1/sqrt(H), 1/sqrt(H)))
# ----------------------------------------------------------------------------
def init_params(key):
    k1 = 1.0 / jnp.sqrt(jnp.float32(HIDDEN1))
    k2 = 1.0 / jnp.sqrt(jnp.float32(HIDDEN2))
    keys = jax.random.split(key, 8)
    u = lambda k, shape, lim: jax.random.uniform(
        k, shape, jnp.float32, minval=-lim, maxval=lim)
    return {
        "w_ih1": u(keys[0], (HIDDEN1, IN_FEATURES), k1),
        "w_hh1": u(keys[1], (HIDDEN1, HIDDEN1), k1),
        "b_ih1": u(keys[2], (HIDDEN1,), k1),
        "b_hh1": u(keys[3], (HIDDEN1,), k1),
        "w_ih2": u(keys[4], (HIDDEN2, HIDDEN1), k2),
        "w_hh2": u(keys[5], (HIDDEN2, HIDDEN2), k2),
        "b_ih2": u(keys[6], (HIDDEN2,), k2),
        "b_hh2": u(keys[7], (HIDDEN2,), k2),
    }


# Pure-JAX reference of the PyTorch forward (for validation).
def mynet_reference(features, score_pitch, former_note, next_note,
                    former_distance, latter_distance, p):
    f32 = jnp.float32
    x = jnp.concatenate(
        [features.astype(f32),
         score_pitch.astype(f32)[:, None],
         former_note.astype(f32)[:, None],
         next_note.astype(f32)[:, None],
         former_distance.astype(f32)[:, None],
         latter_distance.astype(f32)[:, None]], axis=1)

    def step(carry, x_t):
        h1, h2 = carry
        h1 = jnp.tanh(x_t @ p["w_ih1"].T + p["b_ih1"] + h1 @ p["w_hh1"].T + p["b_hh1"])
        y1 = jnp.tanh(h1)
        h2 = jnp.tanh(y1 @ p["w_ih2"].T + p["b_ih2"] + h2 @ p["w_hh2"].T + p["b_hh2"])
        return (h1, h2), h2

    init = (jnp.zeros((HIDDEN1,), f32), jnp.zeros((HIDDEN2,), f32))
    _, ys = lax.scan(step, init, x)
    return ys     # (n, 1)


def _make_inputs(key, n):
    k_f, k1, k2, k3, k4, k5 = jax.random.split(key, 6)
    return (jax.random.normal(k_f, (n, FEAT), jnp.float32),
            jax.random.normal(k1, (n,), jnp.float32),
            jax.random.normal(k2, (n,), jnp.float32),
            jax.random.normal(k3, (n,), jnp.float32),
            jax.random.normal(k4, (n,), jnp.float32),
            jax.random.normal(k5, (n,), jnp.float32))


if __name__ == "__main__":
    key = jax.random.PRNGKey(0)
    k_par, k_in1, k_in2 = jax.random.split(key, 3)
    params = init_params(k_par)

    # Test 1: small sequence, single chunk.
    n = 8
    ins = _make_inputs(k_in1, n)
    out = jax.block_until_ready(mynet_pallas(*ins, params))
    ref = mynet_reference(*ins, params)
    assert out.shape == (n, 1), out.shape
    assert jnp.allclose(out, ref, atol=1e-3, rtol=1e-3), (out, ref)

    # Test 2: multi-chunk path (2 full chunks + 1 clamped partial chunk).
    n2 = 40
    ins2 = _make_inputs(k_in2, n2)
    out2 = jax.block_until_ready(mynet_pallas(*ins2, params, tn=16))
    ref2 = mynet_reference(*ins2, params)
    assert out2.shape == (n2, 1), out2.shape
    assert jnp.allclose(out2, ref2, atol=1e-3, rtol=1e-3), (out2, ref2)

    print("KERNEL_OK")
</pallas_src>

<mosaic_0001>
module attributes {stable_mosaic.version = 11 : i64} {
  func.func @kernel(%arg0: i32, %arg1: memref<8x384xf32, #tpu.memory_space<vmem>>, %arg2: memref<8x8xf32, #tpu.memory_space<vmem>>, %arg3: memref<384x128xf32, #tpu.memory_space<vmem>>, %arg4: memref<8x128xf32, #tpu.memory_space<vmem>>, %arg5: memref<128x128xf32, #tpu.memory_space<vmem>>, %arg6: memref<1x128xf32, #tpu.memory_space<vmem>>, %arg7: memref<1x128xf32, #tpu.memory_space<vmem>>, %arg8: memref<2xf32, #tpu.memory_space<smem>>, %arg9: memref<8x1xf32, #tpu.memory_space<vmem>>, %arg10: memref<8x128xf32, #tpu.memory_space<vmem>>, %arg11: memref<1x128xf32, #tpu.memory_space<vmem>>, %arg12: memref<1x1xf32, #tpu.memory_space<vmem>>) attributes {dimension_semantics = [#tpu.dimension_semantics<arbitrary>], iteration_bounds = array<i64: 1>, scalar_prefetch = 0 : i64, scratch_operands = 3 : i64, tpu.core_type = #tpu.core_type<tc>, window_params = [{transform_indices = @transform_0, window_bounds = array<i64: 8, 384>}, {transform_indices = @transform_1, window_bounds = array<i64: 8, 8>}, {pipeline_mode = #tpu.pipeline_mode<synchronous>, transform_indices = @transform_2, window_bounds = array<i64: 384, 128>}, {pipeline_mode = #tpu.pipeline_mode<synchronous>, transform_indices = @transform_3, window_bounds = array<i64: 8, 128>}, {pipeline_mode = #tpu.pipeline_mode<synchronous>, transform_indices = @transform_4, window_bounds = array<i64: 128, 128>}, {pipeline_mode = #tpu.pipeline_mode<synchronous>, transform_indices = @transform_5, window_bounds = array<i64: 1, 128>}, {pipeline_mode = #tpu.pipeline_mode<synchronous>, transform_indices = @transform_6, window_bounds = array<i64: 1, 128>}, {transform_indices = @transform_7, window_bounds = array<i64: 2>}, {transform_indices = @transform_8, window_bounds = array<i64: 8, 1>}]} {
    %c0_i32 = arith.constant 0 : i32
    %0 = arith.cmpi eq, %arg0, %c0_i32 : i32
    %1 = arith.extui %0 : i1 to i32
    %c0_i32_0 = arith.constant 0 : i32
    %2 = arith.cmpi ne, %1, %c0_i32_0 : i32
    scf.if %2 {
      %cst_63 = arith.constant 0.000000e+00 : f32
      %185 = vector.broadcast %cst_63 : f32 to vector<1x128xf32>
      %c0_64 = arith.constant 0 : index
      %c0_65 = arith.constant 0 : index
      %186 = vector.load %arg11[%c0_64, %c0_65] : memref<1x128xf32, #tpu.memory_space<vmem>>, vector<1x128xf32>
      tpu.vector_store %arg11[%c0_64, %c0_65], %185 {strides = array<i32>} : memref<1x128xf32, #tpu.memory_space<vmem>>, vector<1x128xf32>,
      %cst_66 = arith.constant 0.000000e+00 : f32
      %187 = vector.broadcast %cst_66 : f32 to vector<1x1xf32>
      %c0_67 = arith.constant 0 : index
      %c0_68 = arith.constant 0 : index
      %188 = vector.load %arg12[%c0_67, %c0_68] : memref<1x1xf32, #tpu.memory_space<vmem>>, vector<1x1xf32>
      tpu.vector_store %arg12[%c0_67, %c0_68], %187 {strides = array<i32>} : memref<1x1xf32, #tpu.memory_space<vmem>>, vector<1x1xf32>,
    } else {
    }
    %c0 = arith.constant 0 : index
    %c0_1 = arith.constant 0 : index
    %3 = vector.load %arg1[%c0, %c0_1] : memref<8x384xf32, #tpu.memory_space<vmem>>, vector<8x384xf32>
    %c0_2 = arith.constant 0 : index
    %c0_3 = arith.constant 0 : index
    %4 = vector.load %arg3[%c0_2, %c0_3] : memref<384x128xf32, #tpu.memory_space<vmem>>, vector<384x128xf32>
    %cst = arith.constant dense<0.000000e+00> : vector<8x128xf32>
    %5 = tpu.matmul %3, %4, %cst {dimension_numbers = #tpu.dot_dimension_numbers<[1], [0], [0], [1], [0, 0, 1, 1], [], []>} : vector<8x384xf32>, vector<384x128xf32>, vector<8x128xf32> -> vector<8x128xf32>
    %c0_4 = arith.constant 0 : index
    %c0_5 = arith.constant 0 : index
    %6 = vector.load %arg6[%c0_4, %c0_5] : memref<1x128xf32, #tpu.memory_space<vmem>>, vector<1x128xf32>
    %7 = vector.broadcast %6 : vector<1x128xf32> to vector<8x128xf32>
    %8 = arith.addf %5, %7 : vector<8x128xf32>
    %c0_6 = arith.constant 0 : index
    %c0_7 = arith.constant 0 : index
    %9 = vector.load %arg2[%c0_6, %c0_7] : memref<8x8xf32, #tpu.memory_space<vmem>>, vector<8x8xf32>
    %10 = vector.extract_strided_slice %9 {offsets = [0, 0], sizes = [8, 1], strides = [1, 1]} : vector<8x8xf32> to vector<8x1xf32>
    %c0_8 = arith.constant 0 : index
    %c0_9 = arith.constant 0 : index
    %11 = vector.load %arg4[%c0_8, %c0_9] : memref<8x128xf32, #tpu.memory_space<vmem>>, vector<1x128xf32>
    %12 = vector.broadcast %10 : vector<8x1xf32> to vector<8x128xf32>
    %13 = vector.broadcast %11 : vector<1x128xf32> to vector<8x128xf32>
    %14 = arith.mulf %12, %13 : vector<8x128xf32>
    %15 = arith.addf %8, %14 : vector<8x128xf32>
    %16 = vector.extract_strided_slice %9 {offsets = [0, 1], sizes = [8, 1], strides = [1, 1]} : vector<8x8xf32> to vector<8x1xf32>
    %c1 = arith.constant 1 : index
    %c0_10 = arith.constant 0 : index
    %17 = vector.load %arg4[%c1, %c0_10] : memref<8x128xf32, #tpu.memory_space<vmem>>, vector<1x128xf32>
    %18 = vector.broadcast %16 : vector<8x1xf32> to vector<8x128xf32>
    %19 = vector.broadcast %17 : vector<1x128xf32> to vector<8x128xf32>
    %20 = arith.mulf %18, %19 : vector<8x128xf32>
    %21 = arith.addf %15, %20 : vector<8x128xf32>
    %22 = vector.extract_strided_slice %9 {offsets = [0, 2], sizes = [8, 1], strides = [1, 1]} : vector<8x8xf32> to vector<8x1xf32>
    %c2 = arith.constant 2 : index
    %c0_11 = arith.constant 0 : index
    %23 = vector.load %arg4[%c2, %c0_11] : memref<8x128xf32, #tpu.memory_space<vmem>>, vector<1x128xf32>
    %24 = vector.broadcast %22 : vector<8x1xf32> to vector<8x128xf32>
    %25 = vector.broadcast %23 : vector<1x128xf32> to vector<8x128xf32>
    %26 = arith.mulf %24, %25 : vector<8x128xf32>
    %27 = arith.addf %21, %26 : vector<8x128xf32>
    %28 = vector.extract_strided_slice %9 {offsets = [0, 3], sizes = [8, 1], strides = [1, 1]} : vector<8x8xf32> to vector<8x1xf32>
    %c3 = arith.constant 3 : index
    %c0_12 = arith.constant 0 : index
    %29 = vector.load %arg4[%c3, %c0_12] : memref<8x128xf32, #tpu.memory_space<vmem>>, vector<1x128xf32>
    %30 = vector.broadcast %28 : vector<8x1xf32> to vector<8x128xf32>
    %31 = vector.broadcast %29 : vector<1x128xf32> to vector<8x128xf32>
    %32 = arith.mulf %30, %31 : vector<8x128xf32>
    %33 = arith.addf %27, %32 : vector<8x128xf32>
    %34 = vector.extract_strided_slice %9 {offsets = [0, 4], sizes = [8, 1], strides = [1, 1]} : vector<8x8xf32> to vector<8x1xf32>
    %c4 = arith.constant 4 : index
    %c0_13 = arith.constant 0 : index
    %35 = vector.load %arg4[%c4, %c0_13] : memref<8x128xf32, #tpu.memory_space<vmem>>, vector<1x128xf32>
    %36 = vector.broadcast %34 : vector<8x1xf32> to vector<8x128xf32>
    %37 = vector.broadcast %35 : vector<1x128xf32> to vector<8x128xf32>
    %38 = arith.mulf %36, %37 : vector<8x128xf32>
    %39 = arith.addf %33, %38 : vector<8x128xf32>
    %c0_14 = arith.constant 0 : index
    %c0_15 = arith.constant 0 : index
    %40 = vector.load %arg10[%c0_14, %c0_15] : memref<8x128xf32, #tpu.memory_space<vmem>>, vector<8x128xf32>
    tpu.vector_store %arg10[%c0_14, %c0_15], %39 {strides = array<i32>} : memref<8x128xf32, #tpu.memory_space<vmem>>, vector<8x128xf32>,
    %c0_16 = arith.constant 0 : index
    %c0_17 = arith.constant 0 : index
    %41 = vector.load %arg5[%c0_16, %c0_17] : memref<128x128xf32, #tpu.memory_space<vmem>>, vector<128x128xf32>
    %c0_18 = arith.constant 0 : index
    %c0_19 = arith.constant 0 : index
    %42 = vector.load %arg7[%c0_18, %c0_19] : memref<1x128xf32, #tpu.memory_space<vmem>>, vector<1x128xf32>
    %c0_20 = arith.constant 0 : index
    %43 = memref.load %arg8[%c0_20] : memref<2xf32, #tpu.memory_space<smem>>
    %c1_21 = arith.constant 1 : index
    %44 = memref.load %arg8[%c1_21] : memref<2xf32, #tpu.memory_space<smem>>
    %c0_22 = arith.constant 0 : index
    %c0_23 = arith.constant 0 : index
    %45 = vector.load %arg11[%c0_22, %c0_23] : memref<1x128xf32, #tpu.memory_space<vmem>>, vector<1x128xf32>
    %c0_24 = arith.constant 0 : index
    %c0_25 = arith.constant 0 : index
    %46 = vector.load %arg12[%c0_24, %c0_25] : memref<1x1xf32, #tpu.memory_space<vmem>>, vector<1x1xf32>
    %c0_i32_26 = arith.constant 0 : i32
    %47 = arith.index_cast %c0_i32_26 : i32 to index
    %c0_27 = arith.constant 0 : index
    %48 = vector.load %arg10[%47, %c0_27] : memref<8x128xf32, #tpu.memory_space<vmem>>, vector<1x128xf32>
    %cst_28 = arith.constant dense<0.000000e+00> : vector<1x128xf32>
    %49 = tpu.matmul %45, %41, %cst_28 {dimension_numbers = #tpu.dot_dimension_numbers<[1], [0], [0], [1], [0, 0, 1, 1], [], []>} : vector<1x128xf32>, vector<128x128xf32>, vector<1x128xf32> -> vector<1x128xf32>
    %50 = arith.addf %48, %49 : vector<1x128xf32>
    %51 = math.tanh %50 : vector<1x128xf32>
    %52 = math.tanh %51 : vector<1x128xf32>
    %53 = arith.mulf %52, %42 : vector<1x128xf32>
    %cst_29 = arith.constant dense<0.000000e+00> : vector<1xf32>
    %54 = vector.multi_reduction <add>, %53, %cst_29 [1] : vector<1x128xf32> to vector<1xf32>
    %55 = vector.shape_cast %54 : vector<1xf32> to vector<1x1xf32>
    %56 = vector.broadcast %44 : f32 to vector<1x1xf32>
    %57 = arith.addf %55, %56 : vector<1x1xf32>
    %58 = vector.broadcast %43 : f32 to vector<1x1xf32>
    %59 = arith.mulf %58, %46 : vector<1x1xf32>
    %60 = arith.addf %57, %59 : vector<1x1xf32>
    %61 = math.tanh %60 : vector<1x1xf32>
    %62 = arith.index_cast %c0_i32_26 : i32 to index
    %c0_30 = arith.constant 0 : index
    %63 = vector.load %arg9[%62, %c0_30] : memref<8x1xf32, #tpu.memory_space<vmem>>, vector<1x1xf32>
    tpu.vector_store %arg9[%62, %c0_30], %61 {strides = array<i32>} : memref<8x1xf32, #tpu.memory_space<vmem>>, vector<1x1xf32>,
    %c1_i32 = arith.constant 1 : i32
    %64 = arith.index_cast %c1_i32 : i32 to index
    %c0_31 = arith.constant 0 : index
    %65 = vector.load %arg10[%64, %c0_31] : memref<8x128xf32, #tpu.memory_space<vmem>>, vector<1x128xf32>
    %cst_32 = arith.constant dense<0.000000e+00> : vector<1x128xf32>
    %66 = tpu.matmul %51, %41, %cst_32 {dimension_numbers = #tpu.dot_dimension_numbers<[1], [0], [0], [1], [0, 0, 1, 1], [], []>} : vector<1x128xf32>, vector<128x128xf32>, vector<1x128xf32> -> vector<1x128xf32>
    %67 = arith.addf %65, %66 : vector<1x128xf32>
    %68 = math.tanh %67 : vector<1x128xf32>
    %69 = math.tanh %68 : vector<1x128xf32>
    %70 = arith.mulf %69, %42 : vector<1x128xf32>
    %cst_33 = arith.constant dense<0.000000e+00> : vector<1xf32>
    %71 = vector.multi_reduction <add>, %70, %cst_33 [1] : vector<1x128xf32> to vector<1xf32>
    %72 = vector.shape_cast %71 : vector<1xf32> to vector<1x1xf32>
    %73 = vector.broadcast %44 : f32 to vector<1x1xf32>
    %74 = arith.addf %72, %73 : vector<1x1xf32>
    %75 = vector.broadcast %43 : f32 to vector<1x1xf32>
    %76 = arith.mulf %75, %61 : vector<1x1xf32>
    %77 = arith.addf %74, %76 : vector<1x1xf32>
    %78 = math.tanh %77 : vector<1x1xf32>
    %79 = arith.index_cast %c1_i32 : i32 to index
    %c0_34 = arith.constant 0 : index
    %80 = vector.load %arg9[%79, %c0_34] : memref<8x1xf32, #tpu.memory_space<vmem>>, vector<1x1xf32>
    tpu.vector_store %arg9[%79, %c0_34], %78 {strides = array<i32>} : memref<8x1xf32, #tpu.memory_space<vmem>>, vector<1x1xf32>,
    %c2_i32 = arith.constant 2 : i32
    %81 = arith.index_cast %c2_i32 : i32 to index
    %c0_35 = arith.constant 0 : index
    %82 = vector.load %arg10[%81, %c0_35] : memref<8x128xf32, #tpu.memory_space<vmem>>, vector<1x128xf32>
    %cst_36 = arith.constant dense<0.000000e+00> : vector<1x128xf32>
    %83 = tpu.matmul %68, %41, %cst_36 {dimension_numbers = #tpu.dot_dimension_numbers<[1], [0], [0], [1], [0, 0, 1, 1], [], []>} : vector<1x128xf32>, vector<128x128xf32>, vector<1x128xf32> -> vector<1x128xf32>
    %84 = arith.addf %82, %83 : vector<1x128xf32>
    %85 = math.tanh %84 : vector<1x128xf32>
    %86 = math.tanh %85 : vector<1x128xf32>
    %87 = arith.mulf %86, %42 : vector<1x128xf32>
    %cst_37 = arith.constant dense<0.000000e+00> : vector<1xf32>
    %88 = vector.multi_reduction <add>, %87, %cst_37 [1] : vector<1x128xf32> to vector<1xf32>
    %89 = vector.shape_cast %88 : vector<1xf32> to vector<1x1xf32>
    %90 = vector.broadcast %44 : f32 to vector<1x1xf32>
    %91 = arith.addf %89, %90 : vector<1x1xf32>
    %92 = vector.broadcast %43 : f32 to vector<1x1xf32>
    %93 = arith.mulf %92, %78 : vector<1x1xf32>
    %94 = arith.addf %91, %93 : vector<1x1xf32>
    %95 = math.tanh %94 : vector<1x1xf32>
    %96 = arith.index_cast %c2_i32 : i32 to index
    %c0_38 = arith.constant 0 : index
    %97 = vector.load %arg9[%96, %c0_38] : memref<8x1xf32, #tpu.memory_space<vmem>>, vector<1x1xf32>
    tpu.vector_store %arg9[%96, %c0_38], %95 {strides = array<i32>} : memref<8x1xf32, #tpu.memory_space<vmem>>, vector<1x1xf32>,
    %c3_i32 = arith.constant 3 : i32
    %98 = arith.index_cast %c3_i32 : i32 to index
    %c0_39 = arith.constant 0 : index
    %99 = vector.load %arg10[%98, %c0_39] : memref<8x128xf32, #tpu.memory_space<vmem>>, vector<1x128xf32>
    %cst_40 = arith.constant dense<0.000000e+00> : vector<1x128xf32>
    %100 = tpu.matmul %85, %41, %cst_40 {dimension_numbers = #tpu.dot_dimension_numbers<[1], [0], [0], [1], [0, 0, 1, 1], [], []>} : vector<1x128xf32>, vector<128x128xf32>, vector<1x128xf32> -> vector<1x128xf32>
    %101 = arith.addf %99, %100 : vector<1x128xf32>
    %102 = math.tanh %101 : vector<1x128xf32>
    %103 = math.tanh %102 : vector<1x128xf32>
    %104 = arith.mulf %103, %42 : vector<1x128xf32>
    %cst_41 = arith.constant dense<0.000000e+00> : vector<1xf32>
    %105 = vector.multi_reduction <add>, %104, %cst_41 [1] : vector<1x128xf32> to vector<1xf32>
    %106 = vector.shape_cast %105 : vector<1xf32> to vector<1x1xf32>
    %107 = vector.broadcast %44 : f32 to vector<1x1xf32>
    %108 = arith.addf %106, %107 : vector<1x1xf32>
    %109 = vector.broadcast %43 : f32 to vector<1x1xf32>
    %110 = arith.mulf %109, %95 : vector<1x1xf32>
    %111 = arith.addf %108, %110 : vector<1x1xf32>
    %112 = math.tanh %111 : vector<1x1xf32>
    %113 = arith.index_cast %c3_i32 : i32 to index
    %c0_42 = arith.constant 0 : index
    %114 = vector.load %arg9[%113, %c0_42] : memref<8x1xf32, #tpu.memory_space<vmem>>, vector<1x1xf32>
    tpu.vector_store %arg9[%113, %c0_42], %112 {strides = array<i32>} : memref<8x1xf32, #tpu.memory_space<vmem>>, vector<1x1xf32>,
    %c4_i32 = arith.constant 4 : i32
    %115 = arith.index_cast %c4_i32 : i32 to index
    %c0_43 = arith.constant 0 : index
    %116 = vector.load %arg10[%115, %c0_43] : memref<8x128xf32, #tpu.memory_space<vmem>>, vector<1x128xf32>
    %cst_44 = arith.constant dense<0.000000e+00> : vector<1x128xf32>
    %117 = tpu.matmul %102, %41, %cst_44 {dimension_numbers = #tpu.dot_dimension_numbers<[1], [0], [0], [1], [0, 0, 1, 1], [], []>} : vector<1x128xf32>, vector<128x128xf32>, vector<1x128xf32> -> vector<1x128xf32>
    %118 = arith.addf %116, %117 : vector<1x128xf32>
    %119 = math.tanh %118 : vector<1x128xf32>
    %120 = math.tanh %119 : vector<1x128xf32>
    %121 = arith.mulf %120, %42 : vector<1x128xf32>
    %cst_45 = arith.constant dense<0.000000e+00> : vector<1xf32>
    %122 = vector.multi_reduction <add>, %121, %cst_45 [1] : vector<1x128xf32> to vector<1xf32>
    %123 = vector.shape_cast %122 : vector<1xf32> to vector<1x1xf32>
    %124 = vector.broadcast %44 : f32 to vector<1x1xf32>
    %125 = arith.addf %123, %124 : vector<1x1xf32>
    %126 = vector.broadcast %43 : f32 to vector<1x1xf32>
    %127 = arith.mulf %126, %112 : vector<1x1xf32>
    %128 = arith.addf %125, %127 : vector<1x1xf32>
    %129 = math.tanh %128 : vector<1x1xf32>
    %130 = arith.index_cast %c4_i32 : i32 to index
    %c0_46 = arith.constant 0 : index
    %131 = vector.load %arg9[%130, %c0_46] : memref<8x1xf32, #tpu.memory_space<vmem>>, vector<1x1xf32>
    tpu.vector_store %arg9[%130, %c0_46], %129 {strides = array<i32>} : memref<8x1xf32, #tpu.memory_space<vmem>>, vector<1x1xf32>,
    %c5_i32 = arith.constant 5 : i32
    %132 = arith.index_cast %c5_i32 : i32 to index
    %c0_47 = arith.constant 0 : index
    %133 = vector.load %arg10[%132, %c0_47] : memref<8x128xf32, #tpu.memory_space<vmem>>, vector<1x128xf32>
    %cst_48 = arith.constant dense<0.000000e+00> : vector<1x128xf32>
    %134 = tpu.matmul %119, %41, %cst_48 {dimension_numbers = #tpu.dot_dimension_numbers<[1], [0], [0], [1], [0, 0, 1, 1], [], []>} : vector<1x128xf32>, vector<128x128xf32>, vector<1x128xf32> -> vector<1x128xf32>
    %135 = arith.addf %133, %134 : vector<1x128xf32>
    %136 = math.tanh %135 : vector<1x128xf32>
    %137 = math.tanh %136 : vector<1x128xf32>
    %138 = arith.mulf %137, %42 : vector<1x128xf32>
    %cst_49 = arith.constant dense<0.000000e+00> : vector<1xf32>
    %139 = vector.multi_reduction <add>, %138, %cst_49 [1] : vector<1x128xf32> to vector<1xf32>
    %140 = vector.shape_cast %139 : vector<1xf32> to vector<1x1xf32>
    %141 = vector.broadcast %44 : f32 to vector<1x1xf32>
    %142 = arith.addf %140, %141 : vector<1x1xf32>
    %143 = vector.broadcast %43 : f32 to vector<1x1xf32>
    %144 = arith.mulf %143, %129 : vector<1x1xf32>
    %145 = arith.addf %142, %144 : vector<1x1xf32>
    %146 = math.tanh %145 : vector<1x1xf32>
    %147 = arith.index_cast %c5_i32 : i32 to index
    %c0_50 = arith.constant 0 : index
    %148 = vector.load %arg9[%147, %c0_50] : memref<8x1xf32, #tpu.memory_space<vmem>>, vector<1x1xf32>
    tpu.vector_store %arg9[%147, %c0_50], %146 {strides = array<i32>} : memref<8x1xf32, #tpu.memory_space<vmem>>, vector<1x1xf32>,
    %c6_i32 = arith.constant 6 : i32
    %149 = arith.index_cast %c6_i32 : i32 to index
    %c0_51 = arith.constant 0 : index
    %150 = vector.load %arg10[%149, %c0_51] : memref<8x128xf32, #tpu.memory_space<vmem>>, vector<1x128xf32>
    %cst_52 = arith.constant dense<0.000000e+00> : vector<1x128xf32>
    %151 = tpu.matmul %136, %41, %cst_52 {dimension_numbers = #tpu.dot_dimension_numbers<[1], [0], [0], [1], [0, 0, 1, 1], [], []>} : vector<1x128xf32>, vector<128x128xf32>, vector<1x128xf32> -> vector<1x128xf32>
    %152 = arith.addf %150, %151 : vector<1x128xf32>
    %153 = math.tanh %152 : vector<1x128xf32>
    %154 = math.tanh %153 : vector<1x128xf32>
    %155 = arith.mulf %154, %42 : vector<1x128xf32>
    %cst_53 = arith.constant dense<0.000000e+00> : vector<1xf32>
    %156 = vector.multi_reduction <add>, %155, %cst_53 [1] : vector<1x128xf32> to vector<1xf32>
    %157 = vector.shape_cast %156 : vector<1xf32> to vector<1x1xf32>
    %158 = vector.broadcast %44 : f32 to vector<1x1xf32>
    %159 = arith.addf %157, %158 : vector<1x1xf32>
    %160 = vector.broadcast %43 : f32 to vector<1x1xf32>
    %161 = arith.mulf %160, %146 : vector<1x1xf32>
    %162 = arith.addf %159, %161 : vector<1x1xf32>
    %163 = math.tanh %162 : vector<1x1xf32>
    %164 = arith.index_cast %c6_i32 : i32 to index
    %c0_54 = arith.constant 0 : index
    %165 = vector.load %arg9[%164, %c0_54] : memref<8x1xf32, #tpu.memory_space<vmem>>, vector<1x1xf32>
    tpu.vector_store %arg9[%164, %c0_54], %163 {strides = array<i32>} : memref<8x1xf32, #tpu.memory_space<vmem>>, vector<1x1xf32>,
    %c7_i32 = arith.constant 7 : i32
    %166 = arith.index_cast %c7_i32 : i32 to index
    %c0_55 = arith.constant 0 : index
    %167 = vector.load %arg10[%166, %c0_55] : memref<8x128xf32, #tpu.memory_space<vmem>>, vector<1x128xf32>
    %cst_56 = arith.constant dense<0.000000e+00> : vector<1x128xf32>
    %168 = tpu.matmul %153, %41, %cst_56 {dimension_numbers = #tpu.dot_dimension_numbers<[1], [0], [0], [1], [0, 0, 1, 1], [], []>} : vector<1x128xf32>, vector<128x128xf32>, vector<1x128xf32> -> vector<1x128xf32>
    %169 = arith.addf %167, %168 : vector<1x128xf32>
    %170 = math.tanh %169 : vector<1x128xf32>
    %171 = math.tanh %170 : vector<1x128xf32>
    %172 = arith.mulf %171, %42 : vector<1x128xf32>
    %cst_57 = arith.constant dense<0.000000e+00> : vector<1xf32>
    %173 = vector.multi_reduction <add>, %172, %cst_57 [1] : vector<1x128xf32> to vector<1xf32>
    %174 = vector.shape_cast %173 : vector<1xf32> to vector<1x1xf32>
    %175 = vector.broadcast %44 : f32 to vector<1x1xf32>
    %176 = arith.addf %174, %175 : vector<1x1xf32>
    %177 = vector.broadcast %43 : f32 to vector<1x1xf32>
    %178 = arith.mulf %177, %163 : vector<1x1xf32>
    %179 = arith.addf %176, %178 : vector<1x1xf32>
    %180 = math.tanh %179 : vector<1x1xf32>
    %181 = arith.index_cast %c7_i32 : i32 to index
    %c0_58 = arith.constant 0 : index
    %182 = vector.load %arg9[%181, %c0_58] : memref<8x1xf32, #tpu.memory_space<vmem>>, vector<1x1xf32>
    tpu.vector_store %arg9[%181, %c0_58], %180 {strides = array<i32>} : memref<8x1xf32, #tpu.memory_space<vmem>>, vector<1x1xf32>,
    %c8_i32 = arith.constant 8 : i32
    %c0_59 = arith.constant 0 : index
    %c0_60 = arith.constant 0 : index
    %183 = vector.load %arg11[%c0_59, %c0_60] : memref<1x128xf32, #tpu.memory_space<vmem>>, vector<1x128xf32>
    tpu.vector_store %arg11[%c0_59, %c0_60], %170 {strides = array<i32>} : memref<1x128xf32, #tpu.memory_space<vmem>>, vector<1x128xf32>,
    %c0_61 = arith.constant 0 : index
    %c0_62 = arith.constant 0 : index
    %184 = vector.load %arg12[%c0_61, %c0_62] : memref<1x1xf32, #tpu.memory_space<vmem>>, vector<1x1xf32>
    tpu.vector_store %arg12[%c0_61, %c0_62], %180 {strides = array<i32>} : memref<1x1xf32, #tpu.memory_space<vmem>>, vector<1x1xf32>,
    return
  }
  func.func @transform_0(%arg0: i32) -> (i32, i32) {
    %c0_i32 = arith.constant 0 : i32
    %c0_i32_0 = arith.constant 0 : i32
    return %arg0, %c0_i32 : i32, i32
  }
  func.func @transform_1(%arg0: i32) -> (i32, i32) {
    %c0_i32 = arith.constant 0 : i32
    %c0_i32_0 = arith.constant 0 : i32
    return %arg0, %c0_i32 : i32, i32
  }
  func.func @transform_2(%arg0: i32) -> (i32, i32) {
    %c0_i32 = arith.constant 0 : i32
    %c0_i32_0 = arith.constant 0 : i32
    %c0_i32_1 = arith.constant 0 : i32
    return %c0_i32, %c0_i32_0 : i32, i32
  }
  func.func @transform_3(%arg0: i32) -> (i32, i32) {
    %c0_i32 = arith.constant 0 : i32
    %c0_i32_0 = arith.constant 0 : i32
    %c0_i32_1 = arith.constant 0 : i32
    return %c0_i32, %c0_i32_0 : i32, i32
  }
  func.func @transform_4(%arg0: i32) -> (i32, i32) {
    %c0_i32 = arith.constant 0 : i32
    %c0_i32_0 = arith.constant 0 : i32
    %c0_i32_1 = arith.constant 0 : i32
    return %c0_i32, %c0_i32_0 : i32, i32
  }
  func.func @transform_5(%arg0: i32) -> (i32, i32) {
    %c0_i32 = arith.constant 0 : i32
    %c0_i32_0 = arith.constant 0 : i32
    %c0_i32_1 = arith.constant 0 : i32
    return %c0_i32, %c0_i32_0 : i32, i32
  }
  func.func @transform_6(%arg0: i32) -> (i32, i32) {
    %c0_i32 = arith.constant 0 : i32
    %c0_i32_0 = arith.constant 0 : i32
    %c0_i32_1 = arith.constant 0 : i32
    return %c0_i32, %c0_i32_0 : i32, i32
  }
  func.func @transform_7(%arg0: i32) -> i32 {
    %c0_i32 = arith.constant 0 : i32
    %c0_i32_0 = arith.constant 0 : i32
    return %c0_i32 : i32
  }
  func.func @transform_8(%arg0: i32) -> (i32, i32) {
    %c0_i32 = arith.constant 0 : i32
    %c0_i32_0 = arith.constant 0 : i32
    return %arg0, %c0_i32 : i32, i32
  }
}

</mosaic_0001>

<bundles_post_ra>
// kernel: tpu_custom_call.1
= control target key start
LH: loop header
LB: loop body
LE: loop exit
PB: predicated region body
PF: predicated region fallthrough
CT: control target
= control target key end

     0   :  { %13 = vsyncpa [#allocation6], 0  ;;  %s2247_s0 = inlined_call_operand.hbm [shape: f32[8,384], index: 0, kind: input, shape index: {}]   ;;  %s2248_s1 = inlined_call_operand.hbm [shape: f32[8,8], index: 1, kind: input, shape index: {}]   ;;  %s2249_s2 = inlined_call_operand.hbm [shape: f32[384,128], index: 2, kind: input, shape index: {}]   ;;  %s2250_s3 = inlined_call_operand.hbm [shape: f32[8,128], index: 3, kind: input, shape index: {}]   ;;  %s2251_s4 = inlined_call_operand.hbm [shape: f32[128,128], index: 4, kind: input, shape index: {}]   ;;  %s2252_s5 = inlined_call_operand.vmem [shape: f32[1,128], index: 5, kind: input, shape index: {}]   ;;  %s2253_s6 = inlined_call_operand.vmem [shape: f32[1,128], index: 6, kind: input, shape index: {}]   ;;  %s2254_s7 = inlined_call_operand.vmem [shape: f32[2], index: 7, kind: input, shape index: {}]   ;;  %s2255_s8 = inlined_call_operand.vmem [shape: f32[8,1], index: 8, kind: output, shape index: {}]  }
   0x1   :  { %14 = vsyncpa [#allocation9], 0 }
   0x2   :  { %15 = vsyncpa [#allocation12], 0 }
   0x3   :  { %16 = vsyncpa [#allocation7], 0  ;;  %s1765_s27 = smov [#allocation8]   ;;  %s1766_s29 = smov [#allocation11]  }
   0x4   :  { %s33_s28 = sshll.u32 %s1765_s27, 4  ;;  %s55_s30 = sshll.u32 %s1766_s29, 4  ;;  %s34_s28 = int_to_ptr.vmem [resolvable:$true] %s33_s28  ;;  %s56_s30 = int_to_ptr.vmem [resolvable:$true] %s55_s30 }
   0x5   :  { %s1653_s9 = scalar_lea.vmem %s34_s28, 128  ;;  %p1658_p1 = scmp.lt.s32.totalorder %s34_s28, %s34_s28 }
   0x6   :  { %p1654_p0 = scmp.ne.s32.totalorder %s34_s28, %s1653_s9  ;;  %p1659_p2 = scmp.lt.s32.totalorder %s1653_s9, %s1653_s9 }
   0x8   :  { %p1660_p3 = por %p1659_p2, %p1658_p1 }
   0xa   :  { %p1661_p4 = pnand %p1660_p3, %p1654_p0 }
   0xc   :  { %1664 = shalt.err (!%p1661_p4)
}
   0xd   :  { %36 = dma.hbm_to_vmem [thread:$0]  %s2248_s1, 128, %s34_s28, [#allocation9]  }
   0xe   :  { %s1673_s12 = scalar_lea.vmem %s56_s30, 128  ;;  %p1678_p6 = scmp.lt.s32.totalorder %s56_s30, %s56_s30 }
   0xf   :  { %p1674_p5 = scmp.ne.s32.totalorder %s56_s30, %s1673_s12  ;;  %p1679_p7 = scmp.lt.s32.totalorder %s1673_s12, %s1673_s12 }
  0x11   :  { %p1680_p8 = por %p1679_p7, %p1678_p6 }
  0x13   :  { %p1681_p9 = pnand %p1680_p8, %p1674_p5 }
  0x15   :  { %1684 = shalt.err (!%p1681_p9)
}
  0x16   :  { %58 = dma.hbm_to_vmem [thread:$0]  %s2250_s3, 128, %s56_s30, [#allocation12]  }
  0x17   :  { %s1767_s15 = smov [#allocation5]   ;;  %s1768_s17 = smov [#allocation10]  }
  0x18   :  { %s23_s16 = sshll.u32 %s1767_s15, 4  ;;  %s42_s18 = sshll.u32 %s1768_s17, 4  ;;  %s24_s16 = int_to_ptr.vmem [resolvable:$true] %s23_s16  ;;  %s43_s18 = int_to_ptr.vmem [resolvable:$true] %s42_s18 }
  0x19   :  { %s1693_s19 = scalar_lea.vmem %s24_s16, 384  ;;  %p1698_p11 = scmp.lt.s32.totalorder %s24_s16, %s24_s16 }
  0x1a   :  { %p1694_p10 = scmp.ne.s32.totalorder %s24_s16, %s1693_s19  ;;  %p1699_p12 = scmp.lt.s32.totalorder %s1693_s19, %s1693_s19 }
  0x1c   :  { %p1700_p13 = por %p1699_p12, %p1698_p11 }
  0x1e   :  { %p1701_p0 = pnand %p1700_p13, %p1694_p10 }
  0x20   :  { %1704 = shalt.err (!%p1701_p0)
}
  0x21   :  { %26 = dma.hbm_to_vmem [thread:$0]  %s2247_s0, 384, %s24_s16, [#allocation6]  }
  0x22   :  { %s1713_s21 = scalar_lea.vmem %s43_s18, 6144  ;;  %p1718_p2 = scmp.lt.s32.totalorder %s43_s18, %s43_s18 }
  0x23   :  { %p1714_p1 = scmp.ne.s32.totalorder %s43_s18, %s1713_s21  ;;  %p1719_p3 = scmp.lt.s32.totalorder %s1713_s21, %s1713_s21 }
  0x25   :  { %p1720_p4 = por %p1719_p3, %p1718_p2 }
  0x27   :  { %p1721_p5 = pnand %p1720_p4, %p1714_p1 }
  0x29   :  { %1724 = shalt.err (!%p1721_p5)
}
  0x2a   :  { %s1769_s3 = smov 128   ;;  %s1770_s22 = smov 8  }
  0x2b   :  { %48 = dma.hbm_to_vmem [thread:$0]  %s2249_s2, 6144, %s43_s18, [#allocation9], %s1769_s3, %s1769_s3, %s1770_s22  }
  0x2c   :  { %s81_s27 = sshll.u32 %s2254_s7, 4  ;;  %s1771_s28 = smov [#allocation13]   ;;  %s82_s27 = int_to_ptr.vmem [resolvable:$true] %s81_s27 }
  0x2d   :  { %s64_s29 = sshll.u32 %s1771_s28, 4  ;;  %s65_s29 = int_to_ptr.vmem [resolvable:$true] %s64_s29 }
  0x2e   :  { %s1733_s0 = scalar_lea.vmem %s65_s29, 2048  ;;  %p1738_p7 = scmp.lt.s32.totalorder %s65_s29, %s65_s29 }
  0x2f   :  { %p1734_p6 = scmp.ne.s32.totalorder %s65_s29, %s1733_s0  ;;  %p1739_p8 = scmp.lt.s32.totalorder %s1733_s0, %s1733_s0 }
  0x31   :  { %p1740_p9 = por %p1739_p8, %p1738_p7 }
  0x33   :  { %p1741_p10 = pnand %p1740_p9, %p1734_p6 }
  0x35   :  { %1744 = shalt.err (!%p1741_p10)
}
  0x36   :  { %70 = dma.hbm_to_vmem [thread:$0]  %s2251_s4, 2048, %s65_s29, [#allocation12], %s1769_s3, %s1769_s3, %s1770_s22  }
  0x37   :  { %s1745_s2 = scalar_lea.vmem %s82_s27, 16  ;;  %p1750_p12 = scmp.lt.s32.totalorder %s82_s27, %s82_s27 }
  0x38   :  { %p1746_p11 = scmp.ne.s32.totalorder %s82_s27, %s1745_s2  ;;  %p1751_p13 = scmp.lt.s32.totalorder %s1745_s2, %s1745_s2 }
  0x3a   :  { %p1752_p0 = por %p1751_p13, %p1750_p12 }
  0x3c   :  { %p1753_p1 = pnand %p1752_p0, %p1746_p11 }
  0x3e   :  { %1756 = shalt.err (!%p1753_p1)
}
  0x3f   :  { %s1772_s7 = smov [#allocation14]  }
  0x40   :  { %84 = dma.vmem_to_smem %s82_s27, 16, %s1772_s7, [#allocation7]  }
  0x41   :  { %1757 = dma.done.wait [#allocation6], 384  }
  0x42   :  { %1758 = vsyncadd [#allocation6], 4294966912 }
  0x43   :  { %1759 = dma.done.wait [#allocation9], 6272  }
  0x44   :  { %1760 = vsyncadd [#allocation9], 4294961024 }
  0x45   :  { %1761 = dma.done.wait [#allocation12], 2176  }
  0x46   :  { %1762 = vsyncadd [#allocation12], 4294965120 }
  0x47   :  { %1763 = dma.done.wait [#allocation7], 16  }
  0x48   :  { %1764 = vsyncadd [#allocation7], 4294967280 }
  0x49   :  { %103 = sfence }
  0x4a   :  { %v145_v0 = vld [vmem:[#allocation10 + $0xf8] sm:$0xff]  ;;  %v144_v2 = vld [vmem:[#allocation10 + $0xf0] sm:$0xff]  ;;  %v1773_v4 = vmov 0.0   ;;  %v143_v5 = vld [vmem:[#allocation10 + $0xe8] sm:$0xff]  ;;  %vm1774_vm0 = vmmov 0   ;;  %v1775_v57 = vmov 0  }
  0x4b   :  { %v129_v1 = vld [vmem:[#allocation10 + $0x78] sm:$0xff]  ;;  %1073 = vmatprep.subr.mxu0 %v145_v0  ;;  %v128_v3 = vld [vmem:[#allocation10 + $0x70] sm:$0xff]  ;;  %1261 = vmatprep.subr.mxu1 %v1773_v4  ;;  %108 = vst [vmem:[#allocation3] sm:$0x1] %v1773_v4  ;;  %v127_v7 = vld [vmem:[#allocation10 + $0x68] sm:$0xff]  ;;  %v1776_v59 = vmov 2  }
  0x4c   :  { %1074 = vmatpush3.msra.mxu0 %v129_v1  ;;  %v161_v6 = vld [vmem:[#allocation10 + $0x178] sm:$0xff]  ;;  %1293 = vmatprep.mubr.msk.f32.mxu1 %vm1774_vm0, %v1773_v4  ;;  %v160_v8 = vld [vmem:[#allocation10 + $0x170] sm:$0xff]  ;;  %v142_v9 = vld [vmem:[#allocation10 + $0xe0] sm:$0xff]  ;;  %v1777_v62 = vmov 1   ;;  %v1778_v0 = vmov 3   ;;  %vm109_vm1 = vcmask 0  }
  0x4d   :  { %1075 = vmatprep.subr.mxu0 %v144_v2  ;;  %1262 = vmatpush3.msra.mxu1 %v161_v6  ;;  %v159_v10 = vld [vmem:[#allocation10 + $0x168] sm:$0xff]  ;;  %v126_v11 = vld [vmem:[#allocation10 + $0x60] sm:$0xff]  ;;  %v141_v12 = vld [vmem:[#allocation10 + $0xd8] sm:$0xff]  ;;  %110 = vst.msk [vmem:[#allocation4] sm:$0x1] %vm109_vm1, %v1773_v4  ;;  %vm463_vm2 = vcmask 1040384  }
  0x4e   :  { %1076 = vmatpush3.msra.mxu0 %v128_v3  ;;  %1263 = vmatprep.subr.mxu1 %v1773_v4  ;;  %v158_v13 = vld [vmem:[#allocation10 + $0x160] sm:$0xff]  ;;  %v125_v14 = vld [vmem:[#allocation10 + $0x58] sm:$0xff]  ;;  %v140_v15 = vld [vmem:[#allocation10 + $0xd0] sm:$0xff]  ;;  %s1072_s12 = sld [smem:[#allocation14 + $0x1]] }
  0x4f   :  { %1077 = vmatprep.subr.mxu0 %v143_v5  ;;  %1264 = vmatpush3.msra.mxu1 %v160_v8  ;;  %v157_v16 = vld [vmem:[#allocation10 + $0x158] sm:$0xff]  ;;  %v124_v17 = vld [vmem:[#allocation10 + $0x50] sm:$0xff]  ;;  %v139_v18 = vld [vmem:[#allocation10 + $0xc8] sm:$0xff]  ;;  %v1779_v5 = vmov 4  }
  0x50   :  { %1078 = vmatpush3.msra.mxu0 %v127_v7  ;;  %1265 = vmatprep.subr.mxu1 %v1773_v4  ;;  %v156_v19 = vld [vmem:[#allocation10 + $0x150] sm:$0xff]  ;;  %v123_v20 = vld [vmem:[#allocation10 + $0x48] sm:$0xff]  ;;  %v138_v21 = vld [vmem:[#allocation10 + $0xc0] sm:$0xff] }
  0x51   :  { %1079 = vmatprep.subr.mxu0 %v142_v9  ;;  %1266 = vmatpush3.msra.mxu1 %v159_v10  ;;  %v155_v22 = vld [vmem:[#allocation10 + $0x148] sm:$0xff]  ;;  %v122_v23 = vld [vmem:[#allocation10 + $0x40] sm:$0xff]  ;;  %v137_v24 = vld [vmem:[#allocation10 + $0xb8] sm:$0xff] }
  0x52   :  { %1080 = vmatpush3.msra.mxu0 %v126_v11  ;;  %1267 = vmatprep.subr.mxu1 %v1773_v4  ;;  %v154_v25 = vld [vmem:[#allocation10 + $0x140] sm:$0xff]  ;;  %v121_v26 = vld [vmem:[#allocation10 + $0x38] sm:$0xff]  ;;  %v136_v27 = vld [vmem:[#allocation10 + $0xb0] sm:$0xff] }
  0x53   :  { %1081 = vmatprep.subr.mxu0 %v141_v12  ;;  %1268 = vmatpush3.msra.mxu1 %v158_v13  ;;  %v153_v28 = vld [vmem:[#allocation10 + $0x138] sm:$0xff]  ;;  %v120_v29 = vld [vmem:[#allocation10 + $0x30] sm:$0xff]  ;;  %v135_v30 = vld [vmem:[#allocation10 + $0xa8] sm:$0xff] }
  0x54   :  { %1082 = vmatpush3.msra.mxu0 %v125_v14  ;;  %1269 = vmatprep.subr.mxu1 %v1773_v4  ;;  %v152_v31 = vld [vmem:[#allocation10 + $0x130] sm:$0xff]  ;;  %v119_v32 = vld [vmem:[#allocation10 + $0x28] sm:$0xff]  ;;  %v134_v33 = vld [vmem:[#allocation10 + $0xa0] sm:$0xff] }
  0x55   :  { %1083 = vmatprep.subr.mxu0 %v140_v15  ;;  %1270 = vmatpush3.msra.mxu1 %v157_v16  ;;  %v151_v34 = vld [vmem:[#allocation10 + $0x128] sm:$0xff]  ;;  %v118_v35 = vld [vmem:[#allocation10 + $0x20] sm:$0xff]  ;;  %v133_v36 = vld [vmem:[#allocation10 + $0x98] sm:$0xff] }
  0x56   :  { %1084 = vmatpush3.msra.mxu0 %v124_v17  ;;  %1271 = vmatprep.subr.mxu1 %v1773_v4  ;;  %v150_v37 = vld [vmem:[#allocation10 + $0x120] sm:$0xff]  ;;  %v117_v38 = vld [vmem:[#allocation10 + $0x18] sm:$0xff]  ;;  %v132_v39 = vld [vmem:[#allocation10 + $0x90] sm:$0xff] }
  0x57   :  { %1085 = vmatprep.subr.mxu0 %v139_v18  ;;  %1272 = vmatpush3.msra.mxu1 %v156_v19  ;;  %v112_v40 = vld [vmem:[#allocation5 + $0x8] sm:$0xff]  ;;  %v116_v41 = vld [vmem:[#allocation10 + $0x10] sm:$0xff]  ;;  %v149_v42 = vld [vmem:[#allocation10 + $0x118] sm:$0xff] }
  0x58   :  { %1086 = vmatpush3.msra.mxu0 %v123_v20  ;;  %1273 = vmatprep.subr.mxu1 %v1773_v4  ;;  %v131_v43 = vld [vmem:[#allocation10 + $0x88] sm:$0xff]  ;;  %v148_v45 = vld [vmem:[#allocation10 + $0x110] sm:$0xff]  ;;  %v130_v46 = vld [vmem:[#allocation10 + $0x80] sm:$0xff] }
  0x59   :  { %1087 = vmatprep.subr.mxu0 %v138_v21  ;;  %1274 = vmatpush3.msra.mxu1 %v155_v22  ;;  %v115_v44 = vld [vmem:[#allocation10 + $0x8] sm:$0xff]  ;;  %v114_v47 = vld [vmem:[#allocation10] sm:$0xff]  ;;  %v1864_v52 = vld [vmem:[#allocation13 + $0x70] sm:$0xff] }
  0x5a   :  { %1088 = vmatpush3.msra.mxu0 %v122_v23  ;;  %1275 = vmatprep.subr.mxu1 %v1773_v4  ;;  %v147_v48 = vld [vmem:[#allocation10 + $0x108] sm:$0xff]  ;;  %v111_v49 = vld [vmem:[#allocation5] sm:$0xff]  ;;  %v113_v53 = vld [vmem:[#allocation5 + $0x10] sm:$0xff] }
  0x5b   :  { %1089 = vmatprep.subr.mxu0 %v137_v24  ;;  %1276 = vmatpush3.msra.mxu1 %v154_v25  ;;  %v1860_v50 = vld [vmem:[#allocation13 + $0x78] sm:$0xff]  ;;  %v1869_v54 = vld [vmem:[#allocation13 + $0x68] sm:$0xff]  ;;  %v1873_v55 = vld [vmem:[#allocation13 + $0x60] sm:$0xff] }
  0x5c   :  { %1090 = vmatpush3.msra.mxu0 %v121_v26  ;;  %1277 = vmatprep.subr.mxu1 %v1773_v4  ;;  %v146_v51 = vld [vmem:[#allocation10 + $0x100] sm:$0xff]  ;;  %v309_v56 = vld [vmem:[#allocation8] sm:$0xff]  ;;  %v1888_v61 = vld [vmem:[#allocation13 + $0x48] sm:$0xff] }
  0x5d   :  { %1091 = vmatprep.subr.mxu0 %v136_v27  ;;  %1278 = vmatpush3.msra.mxu1 %v153_v28  ;;  %v1879_v58 = vld [vmem:[#allocation13 + $0x58] sm:$0xff]  ;;  %v1883_v60 = vld [vmem:[#allocation13 + $0x50] sm:$0xff]  ;;  %v1893_v63 = vld [vmem:[#allocation13 + $0x40] sm:$0xff] }
  0x5e   :  { %1092 = vmatpush3.msra.mxu0 %v120_v29  ;;  %1279 = vmatprep.subr.mxu1 %v1773_v4  ;;  %v1897_v1 = vld [vmem:[#allocation13 + $0x38] sm:$0xff]  ;;  %v1902_v2 = vld [vmem:[#allocation13 + $0x30] sm:$0xff]  ;;  %v1908_v3 = vld [vmem:[#allocation13 + $0x28] sm:$0xff] }
  0x5f   :  { %1093 = vmatprep.subr.mxu0 %v135_v30  ;;  %1280 = vmatpush3.msra.mxu1 %v152_v31  ;;  %v1913_v6 = vld [vmem:[#allocation13 + $0x20] sm:$0xff]  ;;  %v1919_v7 = vld [vmem:[#allocation13 + $0x18] sm:$0xff]  ;;  %v1925_v8 = vld [vmem:[#allocation13 + $0x10] sm:$0xff] }
  0x60   :  { %1094 = vmatpush3.msra.mxu0 %v119_v32  ;;  %1281 = vmatprep.subr.mxu1 %v1773_v4  ;;  %v1931_v9 = vld [vmem:[#allocation13 + $0x8] sm:$0xff]  ;;  %v1937_v10 = vld [vmem:[#allocation13] sm:$0xff]  ;;  %v386_v11 = vld [vmem:[#allocation3] sm:$0x1] }
  0x61   :  { %1095 = vmatprep.subr.mxu0 %v134_v33  ;;  %1282 = vmatpush3.msra.mxu1 %v151_v34  ;;  %v1067_v16 = vld [vmem:[#allocation11] ss:$0 sm:$0xff]  ;;  %v1066_v17 = vld [vmem:[%s2252_s5] ss:$0 sm:$0xff]  ;;  %v1068_v20 = vld [vmem:[#allocation11 + $0x1] ss:$0 sm:$0xff] }
  0x62   :  { %1096 = vmatpush3.msra.mxu0 %v118_v35  ;;  %1283 = vmatprep.subr.mxu1 %v1773_v4  ;;  %v1069_v26 = vld [vmem:[#allocation11 + $0x2] ss:$0 sm:$0xff]  ;;  %v1070_v29 = vld [vmem:[#allocation11 + $0x3] ss:$0 sm:$0xff]  ;;  %v1071_v32 = vld [vmem:[#allocation11 + $0x4] ss:$0 sm:$0xff] }
  0x63   :  { %1097 = vmatprep.subr.mxu0 %v133_v36  ;;  %1284 = vmatpush3.msra.mxu1 %v150_v37 }
  0x64   :  { %1098 = vmatpush3.msra.mxu0 %v117_v38  ;;  %1285 = vmatprep.subr.mxu1 %v1773_v4 }
  0x65   :  { %1099 = vmatprep.subr.mxu0 %v132_v39  ;;  %233 = vmatprep.mubr.f32.mxu0 %v112_v40 }
  0x66   :  { %1100 = vmatpush3.msra.mxu0 %v116_v41  ;;  %1286 = vmatpush3.msra.mxu1 %v149_v42 }
  0x67   :  { %1101 = vmatprep.subr.mxu0 %v131_v43  ;;  %1287 = vmatprep.subr.mxu1 %v1773_v4 }
  0x68   :  { %1102 = vmatpush3.msra.mxu0 %v115_v44  ;;  %1288 = vmatpush3.msra.mxu1 %v148_v45  ;;  %v2020_v45 = vld [vmem:[%s2253_s6] sm:$0x1]  ;;  %s384_s6 = sld [smem:[#allocation14]] }
  0x69   :  { %1103 = vmatprep.subr.mxu0 %v130_v46  ;;  %1289 = vmatprep.subr.mxu1 %v1773_v4 }
  0x6a   :  { %1104 = vmatpush3.msra.mxu0 %v114_v47  ;;  %1290 = vmatpush3.msra.mxu1 %v147_v48 }
  0x6b   :  { %234 = vmatmul.mubr.f32.vlgmr.msra.gmra.mxu0 %v111_v49  ;;  %1296 = vmatprep.subr.mxu0 %v1773_v4  ;;  %v387_v49 = vld [vmem:[#allocation4] sm:$0x1] }
  0x6c   :  { %1297 = vmatpush3.msra.mxu0 %v1860_v50  ;;  %1291 = vmatprep.subr.mxu1 %v1773_v4 }
  0x6d   :  { %1298 = vmatprep.subr.mxu0 %v1773_v4  ;;  %1292 = vmatpush3.msra.mxu1 %v146_v51 }
  0x6e   :  { %1299 = vmatpush3.msra.mxu0 %v1864_v52  ;;  %1294 = vmatmul.mubr.f32.vlgmr.msra.gmra.mxu1 %v113_v53  ;;  %v2046_v51 = vstv %s384_s6  ;;  %v2048_v53 = vstv %s1072_s12 }
  0x6f   :  { %1300 = vmatprep.subr.mxu0 %v1773_v4  ;;  %1328 = vmatprep.mubr.msk.f32.mxu0 %vm1774_vm0, %v1773_v4 }
  0x70   :  { %1301 = vmatpush3.msra.mxu0 %v1869_v54  ;;  %1591 = vset.pattern.permute.xlu0 %v1775_v57 }
  0x71   :  { %1302 = vmatprep.subr.mxu0 %v1773_v4  ;;  %1593 = vset.pattern.permute.xlu1 %v1776_v59 }
  0x72   :  { %1303 = vmatpush3.msra.mxu0 %v1873_v55  ;;  %313 = vperm.xlu0 %1591, %v309_v56  }
  0x73   :  { %1304 = vmatprep.subr.mxu0 %v1773_v4  ;;  %335 = vperm.xlu1 %1593, %v309_v56  }
  0x74   :  { %1305 = vmatpush3.msra.mxu0 %v1879_v58  ;;  %1331 = vmatprep.subr.mxu1 %v1773_v4 }
  0x75   :  { %1306 = vmatprep.subr.mxu0 %v1773_v4  ;;  %1332 = vmatpush3.msra.mxu1 %v1860_v50 }
  0x76   :  { %1307 = vmatpush3.msra.mxu0 %v1883_v60  ;;  %1592 = vset.pattern.permute.xlu0 %v1777_v62 }
  0x77   :  { %1308 = vmatprep.subr.mxu0 %v1773_v4  ;;  %1594 = vset.pattern.permute.xlu1 %v1778_v0 }
  0x78   :  { %1309 = vmatpush3.msra.mxu0 %v1888_v61  ;;  %324 = vperm.xlu0 %1592, %v309_v56  }
  0x79   :  { %1310 = vmatprep.subr.mxu0 %v1773_v4  ;;  %346 = vperm.xlu1 %1594, %v309_v56  }
  0x7a   :  { %1311 = vmatpush3.msra.mxu0 %v1893_v63  ;;  %1333 = vmatprep.subr.mxu1 %v1773_v4 }
  0x7b   :  { %1312 = vmatprep.subr.mxu0 %v1773_v4  ;;  %1334 = vmatpush3.msra.mxu1 %v1864_v52 }
  0x7c   :  { %1313 = vmatpush3.msra.mxu0 %v1897_v1  ;;  %1335 = vmatprep.subr.mxu1 %v1773_v4 }
  0x7d   :  { %1314 = vmatprep.subr.mxu0 %v1773_v4  ;;  %1595 = vset.pattern.permute.xlu1 %v1779_v5 }
  0x7e   :  { %1315 = vmatpush3.msra.mxu0 %v1902_v2  ;;  %357 = vperm.xlu1 %1595, %v309_v56   ;;  %v470_v56 = vmul.f32 %v2046_v51, %v387_v49 }
  0x7f   :  { %1316 = vmatprep.subr.mxu0 %v1773_v4  ;;  %1336 = vmatpush3.msra.mxu1 %v1869_v54 }
  0x80   :  { %1317 = vmatpush3.msra.mxu0 %v1908_v3  ;;  %1337 = vmatprep.subr.mxu1 %v1773_v4 }
  0x81   :  { %1318 = vmatprep.subr.mxu0 %v1773_v4  ;;  %1338 = vmatpush3.msra.mxu1 %v1873_v55 }
  0x82   :  { %1319 = vmatpush3.msra.mxu0 %v1913_v6  ;;  %1339 = vmatprep.subr.mxu1 %v1773_v4 }
  0x83   :  { %1320 = vmatprep.subr.mxu0 %v1773_v4  ;;  %1340 = vmatpush3.msra.mxu1 %v1879_v58 }
  0x84   :  { %1321 = vmatpush3.msra.mxu0 %v1919_v7  ;;  %1341 = vmatprep.subr.mxu1 %v1773_v4 }
  0x85   :  { %1322 = vmatprep.subr.mxu0 %v1773_v4  ;;  %1342 = vmatpush3.msra.mxu1 %v1883_v60 }
  0x86   :  { %1323 = vmatpush3.msra.mxu0 %v1925_v8  ;;  %1343 = vmatprep.subr.mxu1 %v1773_v4 }
  0x87   :  { %1324 = vmatprep.subr.mxu0 %v1773_v4  ;;  %1344 = vmatpush3.msra.mxu1 %v1888_v61 }
  0x88   :  { %1325 = vmatpush3.msra.mxu0 %v1931_v9  ;;  %1345 = vmatprep.subr.mxu1 %v1773_v4 }
  0x89   :  { %1326 = vmatprep.subr.mxu0 %v1773_v4  ;;  %1346 = vmatpush3.msra.mxu1 %v1893_v63 }
  0x8a   :  { %1327 = vmatpush3.msra.mxu0 %v1937_v10  ;;  %1347 = vmatprep.subr.mxu1 %v1773_v4 }
  0x8b   :  { %1329 = vmatmul.mubr.f32.vlgmr.msra.gmra.mxu0 %v386_v11  ;;  %1348 = vmatpush3.msra.mxu1 %v1897_v1 }
  0x8c   :  { %1349 = vmatprep.subr.mxu1 %v1773_v4  ;;  %1363 = vmatprep.mubr.msk.f32.mxu1 %vm1774_vm0, %v1773_v4 }
  0x8d   :  { %1350 = vmatpush3.msra.mxu1 %v1902_v2  ;;  %1366 = vmatprep.subr.mxu0 %v1773_v4 }
  0x8e   :  { %1351 = vmatprep.subr.mxu1 %v1773_v4  ;;  %1367 = vmatpush3.msra.mxu0 %v1860_v50 }
  0x8f   :  { %1352 = vmatpush3.msra.mxu1 %v1908_v3  ;;  %1368 = vmatprep.subr.mxu0 %v1773_v4 }
  0x90   :  { %1353 = vmatprep.subr.mxu1 %v1773_v4  ;;  %1369 = vmatpush3.msra.mxu0 %v1864_v52 }
  0x91   :  { %1354 = vmatpush3.msra.mxu1 %v1913_v6  ;;  %1370 = vmatprep.subr.mxu0 %v1773_v4 }
  0x92   :  { %1355 = vmatprep.subr.mxu1 %v1773_v4  ;;  %1371 = vmatpush3.msra.mxu0 %v1869_v54 }
  0x93   :  { %1356 = vmatpush3.msra.mxu1 %v1919_v7  ;;  %1372 = vmatprep.subr.mxu0 %v1773_v4 }
  0x94   :  { %1357 = vmatprep.subr.mxu1 %v1773_v4  ;;  %1373 = vmatpush3.msra.mxu0 %v1873_v55 }
  0x95   :  { %1358 = vmatpush3.msra.mxu1 %v1925_v8  ;;  %1374 = vmatprep.subr.mxu0 %v1773_v4 }
  0x96   :  { %1359 = vmatprep.subr.mxu1 %v1773_v4  ;;  %1375 = vmatpush3.msra.mxu0 %v1879_v58 }
  0x97   :  { %1360 = vmatpush3.msra.mxu1 %v1931_v9  ;;  %1376 = vmatprep.subr.mxu0 %v1773_v4 }
  0x98   :  { %1361 = vmatprep.subr.mxu1 %v1773_v4  ;;  %1377 = vmatpush3.msra.mxu0 %v1883_v60 }
  0x99   :  { %1362 = vmatpush3.msra.mxu1 %v1937_v10  ;;  %1378 = vmatprep.subr.mxu0 %v1773_v4 }
  0x9a   :  { %1379 = vmatpush3.msra.mxu0 %v1888_v61  ;;  %1398 = vmatprep.mubr.msk.f32.mxu0 %vm1774_vm0, %v1773_v4 }
  0x9b   :  { %1380 = vmatprep.subr.mxu0 %v1773_v4  ;;  %1401 = vmatprep.subr.mxu1 %v1773_v4 }
  0x9c   :  { %1381 = vmatpush3.msra.mxu0 %v1893_v63  ;;  %1596 = vset.pattern.permute.xlu0 %v1779_v5 }
  0x9d   :  { %1382 = vmatprep.subr.mxu0 %v1773_v4 }
  0x9e   :  { %1383 = vmatpush3.msra.mxu0 %v1897_v1 }
  0x9f   :  { %1384 = vmatprep.subr.mxu0 %v1773_v4 }
  0xa0   :  { %1385 = vmatpush3.msra.mxu0 %v1902_v2 }
  0xa1   :  { %1386 = vmatprep.subr.mxu0 %v1773_v4 }
  0xa2   :  { %1387 = vmatpush3.msra.mxu0 %v1908_v3 }
  0xa3   :  { %1388 = vmatprep.subr.mxu0 %v1773_v4 }
  0xa4   :  { %1389 = vmatpush3.msra.mxu0 %v1913_v6 }
  0xa5   :  { %1390 = vmatprep.subr.mxu0 %v1773_v4 }
  0xa6   :  { %1391 = vmatpush3.msra.mxu0 %v1919_v7 }
  0xa7   :  { %1392 = vmatprep.subr.mxu0 %v1773_v4 }
  0xa8   :  { %1393 = vmatpush3.msra.mxu0 %v1925_v8 }
  0xa9   :  { %1394 = vmatprep.subr.mxu0 %v1773_v4 }
  0xaa   :  { %1395 = vmatpush3.msra.mxu0 %v1931_v9 }
  0xab   :  { %1396 = vmatprep.subr.mxu0 %v1773_v4 }
  0xac   :  { %1397 = vmatpush3.msra.mxu0 %v1937_v10 }
  0xad   :  { %1436 = vmatprep.subr.mxu0 %v1773_v4 }
  0xed   :  { %v314_v12 = vpop.permute.xlu0 %313 }
  0xee   :  { %v336_v13 = vpop.permute.xlu1 %335  ;;  %v320_v23 = vmul.f32 %v1067_v16, %v314_v12 }
  0xef   :  { %v342_v30 = vmul.f32 %v1069_v26, %v336_v13 }
  0xf3   :  { %v325_v21 = vpop.permute.xlu0 %324 }
  0xf4   :  { %v347_v22 = vpop.permute.xlu1 %346  ;;  %v331_v28 = vmul.f32 %v1068_v20, %v325_v21 }
  0xf5   :  { %v353_v35 = vmul.f32 %v1070_v29, %v347_v22 }
  0xf9   :  { %v358_v33 = vpop.permute.xlu1 %357 }
  0xfa   :  { %v364_v37 = vmul.f32 %v1071_v32, %v358_v33 }
 0x12b   :  { %v1105_v14 = vpop.f32.mrf.mxu0 }
 0x12d   :  { %v1106_v15 = vpop.f32.mrf.mxu0 }
 0x12e   :  { %v1107_v18 = vadd.f32 %v1106_v15, %v1105_v14  ;;  %v305_v19 = vpop.f32.mrf.mxu1 }
 0x130   :  { %v236_v24 = vadd.f32 %v1107_v18, %v1066_v17  ;;  %v1295_v25 = vpop.f32.mrf.mxu1 }
 0x132   :  { %v306_v27 = vadd.f32 %v305_v19, %v236_v24 }
 0x134   :  { %v321_v31 = vadd.f32 %v320_v23, %v306_v27 }
 0x136   :  { %v332_v34 = vadd.f32 %v331_v28, %v321_v31 }
 0x138   :  { %v343_v36 = vadd.f32 %v342_v30, %v332_v34 }
 0x13a   :  { %v354_v38 = vadd.f32 %v353_v35, %v343_v36 }
 0x13c   :  { %v365_v39 = vadd.f32 %v364_v37, %v354_v38 }
 0x13e   :  { %366 = vst [vmem:[#allocation2] sm:$0xff] %v365_v39 }
 0x145   :  { %v388_v40 = vld [vmem:[#allocation2] sm:$0x1]  ;;  %v475_v5 = vld [vmem:[#allocation2 + $0x1] sm:$0x1]  ;;  %v558_v23 = vld [vmem:[#allocation2 + $0x2] sm:$0x1] }
 0x146   :  { %v641_v36 = vld [vmem:[#allocation2 + $0x3] sm:$0x1] }
 0x14b   :  { %v455_v41 = vpop.f32.mrf.mxu0 }
 0x14c   :  { %v459_v42 = vadd.f32 %v455_v41, %v388_v40 }
 0x14d   :  { %v1330_v43 = vpop.f32.mrf.mxu0 }
 0x14e   :  { %1597 = vtanh.f32 %v459_v42 }
 0x15b   :  { %v1598_v44 = vpop.eup %1597 }
 0x15c   :  { %1599 = vtanh.f32 %v1598_v44  ;;  %1364 = vmatmul.mubr.f32.vlgmr.msra.gmra.mxu1 %v1598_v44 }
 0x15d   :  { %1402 = vmatpush3.msra.mxu1 %v1860_v50  ;;  %1433 = vmatprep.mubr.msk.f32.mxu1 %vm1774_vm0, %v1773_v4 }
 0x15e   :  { %1403 = vmatprep.subr.mxu1 %v1773_v4 }
 0x15f   :  { %1404 = vmatpush3.msra.mxu1 %v1864_v52 }
 0x160   :  { %1405 = vmatprep.subr.mxu1 %v1773_v4 }
 0x161   :  { %1406 = vmatpush3.msra.mxu1 %v1869_v54 }
 0x162   :  { %1407 = vmatprep.subr.mxu1 %v1773_v4 }
 0x163   :  { %1408 = vmatpush3.msra.mxu1 %v1873_v55 }
 0x164   :  { %1409 = vmatprep.subr.mxu1 %v1773_v4 }
 0x165   :  { %1410 = vmatpush3.msra.mxu1 %v1879_v58 }
 0x166   :  { %1411 = vmatprep.subr.mxu1 %v1773_v4 }
 0x167   :  { %1412 = vmatpush3.msra.mxu1 %v1883_v60 }
 0x168   :  { %1413 = vmatprep.subr.mxu1 %v1773_v4 }
 0x169   :  { %v1600_v46 = vpop.eup %1599  ;;  %1414 = vmatpush3.msra.mxu1 %v1888_v61 }
 0x16a   :  { %v462_v47 = vmul.f32 %v1600_v46, %v2020_v45  ;;  %1415 = vmatprep.subr.mxu1 %v1773_v4 }
 0x16b   :  { %1416 = vmatpush3.msra.mxu1 %v1893_v63 }
 0x16c   :  { %v464_v48 = vsel %vm463_vm2, %v462_v47, 0.0  ;;  %1417 = vmatprep.subr.mxu1 %v1773_v4 }
 0x16d   :  { %465 = vadd.xlane.f32.xlu0 %v464_v48  ;;  %1418 = vmatpush3.msra.mxu1 %v1897_v1 }
 0x16e   :  { %1419 = vmatprep.subr.mxu1 %v1773_v4 }
 0x16f   :  { %1420 = vmatpush3.msra.mxu1 %v1902_v2 }
 0x170   :  { %1421 = vmatprep.subr.mxu1 %v1773_v4 }
 0x171   :  { %1422 = vmatpush3.msra.mxu1 %v1908_v3 }
 0x172   :  { %1423 = vmatprep.subr.mxu1 %v1773_v4 }
 0x173   :  { %1424 = vmatpush3.msra.mxu1 %v1913_v6 }
 0x174   :  { %1425 = vmatprep.subr.mxu1 %v1773_v4 }
 0x175   :  { %1426 = vmatpush3.msra.mxu1 %v1919_v7 }
 0x176   :  { %1427 = vmatprep.subr.mxu1 %v1773_v4 }
 0x177   :  { %1428 = vmatpush3.msra.mxu1 %v1925_v8 }
 0x178   :  { %1429 = vmatprep.subr.mxu1 %v1773_v4 }
 0x179   :  { %1430 = vmatpush3.msra.mxu1 %v1931_v9 }
 0x17a   :  { %1431 = vmatprep.subr.mxu1 %v1773_v4 }
 0x17b   :  { %1432 = vmatpush3.msra.mxu1 %v1937_v10 }
 0x17c   :  { %1471 = vmatprep.subr.mxu1 %v1773_v4 }
 0x1f6   :  { %v466_v57 = vpop.xlane.xlu0 %465 }
 0x1f7   :  { %v468_v59 = vadd.f32 %v2048_v53, %v466_v57 }
 0x1f9   :  { %v471_v62 = vadd.f32 %v470_v56, %v468_v59  ;;  %v724_v56 = vld [vmem:[#allocation2 + $0x4] sm:$0x1] }
 0x1fb   :  { %1601 = vtanh.f32 %v471_v62 }
 0x208   :  { %v1602_v0 = vpop.eup %1601 }
 0x209   :  { %474 = vst.msk [vmem:[%s2255_s8] sm:$0x1] %vm109_vm1, %v1602_v0  ;;  %v554_v20 = vmul.f32 %v1602_v0, %v2046_v51 }
 0x21c   :  { %v542_v11 = vpop.f32.mrf.mxu1 }
 0x21d   :  { %v546_v12 = vadd.f32 %v542_v11, %v475_v5 }
 0x21e   :  { %v1365_v13 = vpop.f32.mrf.mxu1 }
 0x21f   :  { %1603 = vtanh.f32 %v546_v12 }
 0x22c   :  { %v1604_v14 = vpop.eup %1603 }
 0x22d   :  { %1605 = vtanh.f32 %v1604_v14  ;;  %1399 = vmatmul.mubr.f32.vlgmr.msra.gmra.mxu0 %v1604_v14  ;;  %v890_v14 = vld [vmem:[#allocation2 + $0x6] sm:$0x1] }
 0x22e   :  { %1437 = vmatpush3.msra.mxu0 %v1860_v50  ;;  %1468 = vmatprep.mubr.msk.f32.mxu0 %vm1774_vm0, %v1773_v4 }
 0x22f   :  { %1438 = vmatprep.subr.mxu0 %v1773_v4 }
 0x230   :  { %1439 = vmatpush3.msra.mxu0 %v1864_v52 }
 0x231   :  { %1440 = vmatprep.subr.mxu0 %v1773_v4 }
 0x232   :  { %1441 = vmatpush3.msra.mxu0 %v1869_v54 }
 0x233   :  { %1442 = vmatprep.subr.mxu0 %v1773_v4 }
 0x234   :  { %1443 = vmatpush3.msra.mxu0 %v1873_v55 }
 0x235   :  { %1444 = vmatprep.subr.mxu0 %v1773_v4 }
 0x236   :  { %1445 = vmatpush3.msra.mxu0 %v1879_v58 }
 0x237   :  { %1446 = vmatprep.subr.mxu0 %v1773_v4 }
 0x238   :  { %1447 = vmatpush3.msra.mxu0 %v1883_v60 }
 0x239   :  { %1448 = vmatprep.subr.mxu0 %v1773_v4 }
 0x23a   :  { %v1606_v15 = vpop.eup %1605  ;;  %1449 = vmatpush3.msra.mxu0 %v1888_v61 }
 0x23b   :  { %v549_v16 = vmul.f32 %v1606_v15, %v2020_v45  ;;  %1450 = vmatprep.subr.mxu0 %v1773_v4 }
 0x23c   :  { %1451 = vmatpush3.msra.mxu0 %v1893_v63 }
 0x23d   :  { %v550_v17 = vsel %vm463_vm2, %v549_v16, 0.0  ;;  %1452 = vmatprep.subr.mxu0 %v1773_v4 }
 0x23e   :  { %551 = vadd.xlane.f32.xlu1 %v550_v17  ;;  %1453 = vmatpush3.msra.mxu0 %v1897_v1 }
 0x23f   :  { %1454 = vmatprep.subr.mxu0 %v1773_v4 }
 0x240   :  { %1455 = vmatpush3.msra.mxu0 %v1902_v2 }
 0x241   :  { %1456 = vmatprep.subr.mxu0 %v1773_v4 }
 0x242   :  { %1457 = vmatpush3.msra.mxu0 %v1908_v3 }
 0x243   :  { %1458 = vmatprep.subr.mxu0 %v1773_v4 }
 0x244   :  { %1459 = vmatpush3.msra.mxu0 %v1913_v6 }
 0x245   :  { %1460 = vmatprep.subr.mxu0 %v1773_v4 }
 0x246   :  { %1461 = vmatpush3.msra.mxu0 %v1919_v7 }
 0x247   :  { %1462 = vmatprep.subr.mxu0 %v1773_v4 }
 0x248   :  { %1463 = vmatpush3.msra.mxu0 %v1925_v8 }
 0x249   :  { %1464 = vmatprep.subr.mxu0 %v1773_v4 }
 0x24a   :  { %1465 = vmatpush3.msra.mxu0 %v1931_v9 }
 0x24b   :  { %1466 = vmatprep.subr.mxu0 %v1773_v4 }
 0x24c   :  { %1467 = vmatpush3.msra.mxu0 %v1937_v10 }
 0x24d   :  { %1506 = vmatprep.subr.mxu0 %v1773_v4 }
 0x2c7   :  { %v552_v18 = vpop.xlane.xlu1 %551 }
 0x2c8   :  { %v553_v19 = vadd.f32 %v552_v18, %v2048_v53 }
 0x2ca   :  { %v555_v21 = vadd.f32 %v554_v20, %v553_v19 }
 0x2cc   :  { %1607 = vtanh.f32 %v555_v21 }
 0x2d9   :  { %v1608_v22 = vpop.eup %1607 }
 0x2da   :  { %557 = vst.msk [vmem:[%s2255_s8 + $0x1] sm:$0x1] %vm109_vm1, %v1608_v22  ;;  %v637_v32 = vmul.f32 %v1608_v22, %v2046_v51 }
 0x2ed   :  { %v625_v24 = vpop.f32.mrf.mxu0 }
 0x2ee   :  { %v629_v25 = vadd.f32 %v625_v24, %v558_v23 }
 0x2ef   :  { %v1400_v26 = vpop.f32.mrf.mxu0 }
 0x2f0   :  { %1609 = vtanh.f32 %v629_v25 }
 0x2fd   :  { %v1610_v27 = vpop.eup %1609 }
 0x2fe   :  { %1611 = vtanh.f32 %v1610_v27  ;;  %1434 = vmatmul.mubr.f32.vlgmr.msra.gmra.mxu1 %v1610_v27  ;;  %v973_v27 = vld [vmem:[#allocation2 + $0x7] sm:$0x1] }
 0x2ff   :  { %1472 = vmatpush3.msra.mxu1 %v1860_v50  ;;  %1503 = vmatprep.mubr.msk.f32.mxu1 %vm1774_vm0, %v1773_v4 }
 0x300   :  { %1473 = vmatprep.subr.mxu1 %v1773_v4 }
 0x301   :  { %1474 = vmatpush3.msra.mxu1 %v1864_v52 }
 0x302   :  { %1475 = vmatprep.subr.mxu1 %v1773_v4 }
 0x303   :  { %1476 = vmatpush3.msra.mxu1 %v1869_v54 }
 0x304   :  { %1477 = vmatprep.subr.mxu1 %v1773_v4 }
 0x305   :  { %1478 = vmatpush3.msra.mxu1 %v1873_v55 }
 0x306   :  { %1479 = vmatprep.subr.mxu1 %v1773_v4 }
 0x307   :  { %1480 = vmatpush3.msra.mxu1 %v1879_v58 }
 0x308   :  { %1481 = vmatprep.subr.mxu1 %v1773_v4 }
 0x309   :  { %1482 = vmatpush3.msra.mxu1 %v1883_v60 }
 0x30a   :  { %1483 = vmatprep.subr.mxu1 %v1773_v4 }
 0x30b   :  { %v1612_v28 = vpop.eup %1611  ;;  %1484 = vmatpush3.msra.mxu1 %v1888_v61 }
 0x30c   :  { %v632_v29 = vmul.f32 %v1612_v28, %v2020_v45  ;;  %1485 = vmatprep.subr.mxu1 %v1773_v4 }
 0x30d   :  { %1486 = vmatpush3.msra.mxu1 %v1893_v63 }
 0x30e   :  { %v633_v30 = vsel %vm463_vm2, %v632_v29, 0.0  ;;  %1487 = vmatprep.subr.mxu1 %v1773_v4 }
 0x30f   :  { %634 = vadd.xlane.f32.xlu0 %v633_v30  ;;  %1488 = vmatpush3.msra.mxu1 %v1897_v1 }
 0x310   :  { %1489 = vmatprep.subr.mxu1 %v1773_v4 }
 0x311   :  { %1490 = vmatpush3.msra.mxu1 %v1902_v2 }
 0x312   :  { %1491 = vmatprep.subr.mxu1 %v1773_v4 }
 0x313   :  { %1492 = vmatpush3.msra.mxu1 %v1908_v3 }
 0x314   :  { %1493 = vmatprep.subr.mxu1 %v1773_v4 }
 0x315   :  { %1494 = vmatpush3.msra.mxu1 %v1913_v6 }
 0x316   :  { %1495 = vmatprep.subr.mxu1 %v1773_v4 }
 0x317   :  { %1496 = vmatpush3.msra.mxu1 %v1919_v7 }
 0x318   :  { %1497 = vmatprep.subr.mxu1 %v1773_v4 }
 0x319   :  { %1498 = vmatpush3.msra.mxu1 %v1925_v8 }
 0x31a   :  { %1499 = vmatprep.subr.mxu1 %v1773_v4 }
 0x31b   :  { %1500 = vmatpush3.msra.mxu1 %v1931_v9 }
 0x31c   :  { %1501 = vmatprep.subr.mxu1 %v1773_v4 }
 0x31d   :  { %1502 = vmatpush3.msra.mxu1 %v1937_v10 }
 0x31e   :  { %1541 = vmatprep.subr.mxu1 %v1773_v4 }
 0x398   :  { %v635_v31 = vpop.xlane.xlu0 %634 }
 0x399   :  { %v636_v33 = vadd.f32 %v635_v31, %v2048_v53 }
 0x39b   :  { %v638_v34 = vadd.f32 %v637_v32, %v636_v33 }
 0x39d   :  { %1613 = vtanh.f32 %v638_v34 }
 0x3aa   :  { %v1614_v35 = vpop.eup %1613 }
 0x3ab   :  { %640 = vst.msk [vmem:[%s2255_s8 + $0x2] sm:$0x1] %vm109_vm1, %v1614_v35  ;;  %v720_v46 = vmul.f32 %v1614_v35, %v2046_v51 }
 0x3be   :  { %v708_v37 = vpop.f32.mrf.mxu1 }
 0x3bf   :  { %v712_v38 = vadd.f32 %v708_v37, %v641_v36 }
 0x3c0   :  { %v1435_v39 = vpop.f32.mrf.mxu1 }
 0x3c1   :  { %1615 = vtanh.f32 %v712_v38 }
 0x3ce   :  { %v1616_v40 = vpop.eup %1615 }
 0x3cf   :  { %1617 = vtanh.f32 %v1616_v40  ;;  %1469 = vmatmul.mubr.f32.vlgmr.msra.gmra.mxu0 %v1616_v40 }
 0x3d0   :  { %1507 = vmatpush3.msra.mxu0 %v1860_v50  ;;  %1538 = vmatprep.mubr.msk.f32.mxu0 %vm1774_vm0, %v1773_v4 }
 0x3d1   :  { %1508 = vmatprep.subr.mxu0 %v1773_v4 }
 0x3d2   :  { %1509 = vmatpush3.msra.mxu0 %v1864_v52 }
 0x3d3   :  { %1510 = vmatprep.subr.mxu0 %v1773_v4 }
 0x3d4   :  { %1511 = vmatpush3.msra.mxu0 %v1869_v54 }
 0x3d5   :  { %1512 = vmatprep.subr.mxu0 %v1773_v4 }
 0x3d6   :  { %1513 = vmatpush3.msra.mxu0 %v1873_v55 }
 0x3d7   :  { %1514 = vmatprep.subr.mxu0 %v1773_v4 }
 0x3d8   :  { %1515 = vmatpush3.msra.mxu0 %v1879_v58 }
 0x3d9   :  { %1516 = vmatprep.subr.mxu0 %v1773_v4 }
 0x3da   :  { %1517 = vmatpush3.msra.mxu0 %v1883_v60 }
 0x3db   :  { %1518 = vmatprep.subr.mxu0 %v1773_v4 }
 0x3dc   :  { %v1618_v41 = vpop.eup %1617  ;;  %1519 = vmatpush3.msra.mxu0 %v1888_v61 }
 0x3dd   :  { %v715_v42 = vmul.f32 %v1618_v41, %v2020_v45  ;;  %1520 = vmatprep.subr.mxu0 %v1773_v4 }
 0x3de   :  { %1521 = vmatpush3.msra.mxu0 %v1893_v63 }
 0x3df   :  { %v716_v43 = vsel %vm463_vm2, %v715_v42, 0.0  ;;  %1522 = vmatprep.subr.mxu0 %v1773_v4 }
 0x3e0   :  { %717 = vadd.xlane.f32.xlu0 %v716_v43  ;;  %1523 = vmatpush3.msra.mxu0 %v1897_v1 }
 0x3e1   :  { %1524 = vmatprep.subr.mxu0 %v1773_v4 }
 0x3e2   :  { %1525 = vmatpush3.msra.mxu0 %v1902_v2 }
 0x3e3   :  { %1526 = vmatprep.subr.mxu0 %v1773_v4 }
 0x3e4   :  { %1527 = vmatpush3.msra.mxu0 %v1908_v3 }
 0x3e5   :  { %1528 = vmatprep.subr.mxu0 %v1773_v4 }
 0x3e6   :  { %1529 = vmatpush3.msra.mxu0 %v1913_v6 }
 0x3e7   :  { %1530 = vmatprep.subr.mxu0 %v1773_v4 }
 0x3e8   :  { %1531 = vmatpush3.msra.mxu0 %v1919_v7 }
 0x3e9   :  { %1532 = vmatprep.subr.mxu0 %v1773_v4 }
 0x3ea   :  { %1533 = vmatpush3.msra.mxu0 %v1925_v8 }
 0x3eb   :  { %1534 = vmatprep.subr.mxu0 %v1773_v4 }
 0x3ec   :  { %1535 = vmatpush3.msra.mxu0 %v1931_v9 }
 0x3ed   :  { %1536 = vmatprep.subr.mxu0 %v1773_v4 }
 0x3ee   :  { %1537 = vmatpush3.msra.mxu0 %v1937_v10 }
 0x469   :  { %v718_v44 = vpop.xlane.xlu0 %717 }
 0x46a   :  { %v719_v47 = vadd.f32 %v718_v44, %v2048_v53 }
 0x46c   :  { %v721_v48 = vadd.f32 %v720_v46, %v719_v47 }
 0x46e   :  { %1619 = vtanh.f32 %v721_v48 }
 0x47b   :  { %v1620_v49 = vpop.eup %1619 }
 0x47c   :  { %723 = vst.msk [vmem:[%s2255_s8 + $0x3] sm:$0x1] %vm109_vm1, %v1620_v49 }
 0x48f   :  { %v791_v57 = vpop.f32.mrf.mxu0 }
 0x490   :  { %v795_v59 = vadd.f32 %v791_v57, %v724_v56 }
 0x491   :  { %v1470_v62 = vpop.f32.mrf.mxu0 }
 0x492   :  { %1621 = vtanh.f32 %v795_v59 }
 0x49f   :  { %v1622_v0 = vpop.eup %1621 }
 0x4a0   :  { %1623 = vtanh.f32 %v1622_v0  ;;  %1504 = vmatmul.mubr.f32.vlgmr.msra.gmra.mxu1 %v1622_v0 }
 0x4a1   :  { %1542 = vmatpush3.msra.mxu1 %v1860_v50  ;;  %1573 = vmatprep.mubr.msk.f32.mxu1 %vm1774_vm0, %v1773_v4 }
 0x4a2   :  { %1543 = vmatprep.subr.mxu1 %v1773_v4 }
 0x4a3   :  { %1544 = vmatpush3.msra.mxu1 %v1864_v52 }
 0x4a4   :  { %1545 = vmatprep.subr.mxu1 %v1773_v4 }
 0x4a5   :  { %1546 = vmatpush3.msra.mxu1 %v1869_v54 }
 0x4a6   :  { %1547 = vmatprep.subr.mxu1 %v1773_v4 }
 0x4a7   :  { %1548 = vmatpush3.msra.mxu1 %v1873_v55 }
 0x4a8   :  { %1549 = vmatprep.subr.mxu1 %v1773_v4 }
 0x4a9   :  { %1550 = vmatpush3.msra.mxu1 %v1879_v58  ;;  %v803_v58 = vmul.f32 %v1620_v49, %v2046_v51 }
 0x4aa   :  { %1551 = vmatprep.subr.mxu1 %v1773_v4 }
 0x4ab   :  { %1552 = vmatpush3.msra.mxu1 %v1883_v60 }
 0x4ac   :  { %1553 = vmatprep.subr.mxu1 %v1773_v4 }
 0x4ad   :  { %v1624_v50 = vpop.eup %1623  ;;  %1554 = vmatpush3.msra.mxu1 %v1888_v61 }
 0x4ae   :  { %v798_v52 = vmul.f32 %v1624_v50, %v2020_v45  ;;  %1555 = vmatprep.subr.mxu1 %v1773_v4 }
 0x4af   :  { %1556 = vmatpush3.msra.mxu1 %v1893_v63 }
 0x4b0   :  { %v799_v54 = vsel %vm463_vm2, %v798_v52, 0.0  ;;  %1557 = vmatprep.subr.mxu1 %v1773_v4 }
 0x4b1   :  { %800 = vadd.xlane.f32.xlu1 %v799_v54  ;;  %1558 = vmatpush3.msra.mxu1 %v1897_v1  ;;  %v807_v1 = vld [vmem:[#allocation2 + $0x5] sm:$0x1] }
 0x4b2   :  { %1559 = vmatprep.subr.mxu1 %v1773_v4 }
 0x4b3   :  { %1560 = vmatpush3.msra.mxu1 %v1902_v2 }
 0x4b4   :  { %1561 = vmatprep.subr.mxu1 %v1773_v4 }
 0x4b5   :  { %1562 = vmatpush3.msra.mxu1 %v1908_v3 }
 0x4b6   :  { %1563 = vmatprep.subr.mxu1 %v1773_v4 }
 0x4b7   :  { %1564 = vmatpush3.msra.mxu1 %v1913_v6 }
 0x4b8   :  { %1565 = vmatprep.subr.mxu1 %v1773_v4 }
 0x4b9   :  { %1566 = vmatpush3.msra.mxu1 %v1919_v7 }
 0x4ba   :  { %1567 = vmatprep.subr.mxu1 %v1773_v4 }
 0x4bb   :  { %1568 = vmatpush3.msra.mxu1 %v1925_v8 }
 0x4bc   :  { %1569 = vmatprep.subr.mxu1 %v1773_v4 }
 0x4bd   :  { %1570 = vmatpush3.msra.mxu1 %v1931_v9 }
 0x4be   :  { %1571 = vmatprep.subr.mxu1 %v1773_v4 }
 0x4bf   :  { %1572 = vmatpush3.msra.mxu1 %v1937_v10 }
 0x53a   :  { %v801_v55 = vpop.xlane.xlu1 %800 }
 0x53b   :  { %v802_v60 = vadd.f32 %v801_v55, %v2048_v53 }
 0x53d   :  { %v804_v61 = vadd.f32 %v803_v58, %v802_v60 }
 0x53f   :  { %1625 = vtanh.f32 %v804_v61 }
 0x54c   :  { %v1626_v63 = vpop.eup %1625 }
 0x54d   :  { %806 = vst.msk [vmem:[%s2255_s8 + $0x4] sm:$0x1] %vm109_vm1, %v1626_v63  ;;  %v886_v11 = vmul.f32 %v1626_v63, %v2046_v51 }
 0x560   :  { %v874_v2 = vpop.f32.mrf.mxu1 }
 0x561   :  { %v878_v3 = vadd.f32 %v874_v2, %v807_v1 }
 0x562   :  { %v1505_v6 = vpop.f32.mrf.mxu1 }
 0x563   :  { %1627 = vtanh.f32 %v878_v3 }
 0x570   :  { %v1628_v4 = vpop.eup %1627 }
 0x571   :  { %1629 = vtanh.f32 %v1628_v4  ;;  %1539 = vmatmul.mubr.f32.vlgmr.msra.gmra.mxu0 %v1628_v4 }
 0x57e   :  { %v1630_v7 = vpop.eup %1629 }
 0x57f   :  { %v881_v8 = vmul.f32 %v1630_v7, %v2020_v45 }
 0x581   :  { %v882_v9 = vsel %vm463_vm2, %v881_v8, 0.0 }
 0x582   :  { %883 = vadd.xlane.f32.xlu0 %v882_v9 }
 0x60b   :  { %v884_v10 = vpop.xlane.xlu0 %883 }
 0x60c   :  { %v885_v5 = vadd.f32 %v884_v10, %v2048_v53 }
 0x60e   :  { %v887_v12 = vadd.f32 %v886_v11, %v885_v5 }
 0x610   :  { %1631 = vtanh.f32 %v887_v12 }
 0x61d   :  { %v1632_v13 = vpop.eup %1631 }
 0x61e   :  { %889 = vst.msk [vmem:[%s2255_s8 + $0x5] sm:$0x1] %vm109_vm1, %v1632_v13  ;;  %v969_v23 = vmul.f32 %v1632_v13, %v2046_v51 }
 0x631   :  { %v957_v15 = vpop.f32.mrf.mxu0 }
 0x632   :  { %v961_v16 = vadd.f32 %v957_v15, %v890_v14 }
 0x633   :  { %v1540_v17 = vpop.f32.mrf.mxu0 }
 0x634   :  { %1633 = vtanh.f32 %v961_v16 }
 0x641   :  { %v1634_v18 = vpop.eup %1633 }
 0x642   :  { %1635 = vtanh.f32 %v1634_v18  ;;  %1574 = vmatmul.mubr.f32.vlgmr.msra.gmra.mxu1 %v1634_v18 }
 0x64f   :  { %v1636_v19 = vpop.eup %1635 }
 0x650   :  { %v964_v20 = vmul.f32 %v1636_v19, %v2020_v45 }
 0x652   :  { %v965_v21 = vsel %vm463_vm2, %v964_v20, 0.0 }
 0x653   :  { %966 = vadd.xlane.f32.xlu1 %v965_v21 }
 0x6dc   :  { %v967_v22 = vpop.xlane.xlu1 %966 }
 0x6dd   :  { %v968_v24 = vadd.f32 %v967_v22, %v2048_v53 }
 0x6df   :  { %v970_v25 = vadd.f32 %v969_v23, %v968_v24 }
 0x6e1   :  { %1637 = vtanh.f32 %v970_v25 }
 0x6ee   :  { %v1638_v26 = vpop.eup %1637 }
 0x6ef   :  { %972 = vst.msk [vmem:[%s2255_s8 + $0x6] sm:$0x1] %vm109_vm1, %v1638_v26  ;;  %v1052_v37 = vmul.f32 %v1638_v26, %v2046_v51 }
 0x702   :  { %v1040_v28 = vpop.f32.mrf.mxu1 }
 0x703   :  { %v1044_v29 = vadd.f32 %v1040_v28, %v973_v27 }
 0x704   :  { %v1575_v30 = vpop.f32.mrf.mxu1 }
 0x705   :  { %1639 = vtanh.f32 %v1044_v29 }
 0x712   :  { %v1640_v31 = vpop.eup %1639 }
 0x713   :  { %1641 = vtanh.f32 %v1640_v31  ;;  %1056 = vst [vmem:[#allocation3] sm:$0x1] %v1640_v31 }
 0x720   :  { %v1642_v32 = vpop.eup %1641 }
 0x721   :  { %v1047_v33 = vmul.f32 %v1642_v32, %v2020_v45 }
 0x723   :  { %v1048_v34 = vsel %vm463_vm2, %v1047_v33, 0.0 }
 0x724   :  { %1049 = vadd.xlane.f32.xlu0 %v1048_v34 }
 0x7ad   :  { %v1050_v35 = vpop.xlane.xlu0 %1049 }
 0x7ae   :  { %v1051_v36 = vadd.f32 %v1050_v35, %v2048_v53 }
 0x7b0   :  { %v1053_v38 = vadd.f32 %v1052_v37, %v1051_v36 }
 0x7b2   :  { %1643 = vtanh.f32 %v1053_v38 }
 0x7bf   :  { %v1644_v39 = vpop.eup %1643 }
 0x7c0   :  { %1055 = vst.msk [vmem:[%s2255_s8 + $0x7] sm:$0x1] %vm109_vm1, %v1644_v39  ;;  %1057 = vst.msk [vmem:[#allocation4] sm:$0x1] %vm109_vm1, %v1644_v39 }
 0x7c1   :  { %1062 = vsyncpa [#allocation6], 1 }
 0x7c2   :  { %1063 = vsyncpa [#allocation9], 1 }
 0x7c3   :  { %1064 = vsyncpa [#allocation12], 1 }
 0x7c4   :  { %1065 = vsyncpa [#allocation7], 1 }

</bundles_post_ra>
